<compile_context>
chip_gen: v7x
topology: tpu7x:2x2x1
jax: 0.10.0
libtpu: 0.0.40
codegen_flags: <defaults>
</compile_context>

<pallas_src>
import jax
import jax.numpy as jnp
from jax import lax
from jax.experimental import pallas as pl
from jax.experimental.pallas import tpu as pltpu

_SQRT1_2 = 0.7071067811865476


def _gelu_exact(x):
    # PyTorch nn.GELU() default (exact, erf-based)
    return 0.5 * x * (1.0 + lax.erf(x * _SQRT1_2))


def convT1x1_p2_gelu_upsample(x_nchw, weight, bias, scale=98):
    """Fused ConvTranspose2d(Cin, Cout, 1, stride=1, padding=2) + exact GELU +
    nearest-neighbour Upsample(scale) in one pallas_call.

    x_nchw: (N, Cin, H, W)   weight: (Cin, Cout, 1, 1)   bias: (Cout,)
    returns (N, Cout, (H-4)*S, (W-4)*S)
    """
    N, Cin, H, W = x_nchw.shape
    Cout = weight.shape[1]
    S = int(scale)
    Hc, Wc = H - 4, W - 4            # padding=2 on a 1x1 transposed conv crops 2px/side
    Hs, Ws = Hc * S, Wc * S
    P = Hc * Wc

    # ---- host-side (XLA) prep: all tiny, done once --------------------------
    # Activations as (N, P, Cin) so the kernel's conv result is a column (P, 1).
    x_mat = x_nchw[:, :, 2:H - 2, 2:W - 2].reshape(N, Cin, P)   # (N, Cin, P)
    x_t = jnp.transpose(x_mat, (0, 2, 1))                        # (N, P, Cin)
    # Per-output-channel weight rows, shaped for a clean (1,1,Cin) BlockSpec.
    w3 = jnp.transpose(weight[:, :, 0, 0])[:, None, :]           # (Cout, 1, Cin)
    b = bias.astype(jnp.float32)                                 # (Cout,) -> SMEM

    # One-hot expansion matrices (exact 0/1 values), passed as VMEM inputs.
    #   E[p, j] = 1  iff  j // S == p %  Wc      (lane/width expansion)
    #   R[i, p] = 1  iff  i // S == p // Wc      (sublane/height expansion)
    p_idx = jnp.arange(P, dtype=jnp.int32)
    e_mat = ((jnp.arange(Ws, dtype=jnp.int32) // S)[None, :]
             == (p_idx % Wc)[:, None]).astype(jnp.float32)       # (P, Ws)
    r_mat = ((jnp.arange(Hs, dtype=jnp.int32) // S)[:, None]
             == (p_idx // Wc)[None, :]).astype(jnp.float32)      # (Hs, P)

    def kernel(x_ref, w_ref, b_ref, e_ref, r_ref, o_ref):
        c = pl.program_id(1)                       # output channel of this step
        x = x_ref[0]                               # (P, Cin)
        w = w_ref[0]                               # (1, Cin)  -- only channel c's row

        # 1x1 transposed conv == channel contraction, full f32 (VPU mul + lane reduce)
        y = jnp.sum(x * w, axis=1, keepdims=True) + b_ref[c]     # (P, 1)
        y = _gelu_exact(y)                                       # GELU on 16 elements

        # nearest-neighbour upsample: one-hot expansion on the (otherwise idle) MXU
        ymat = y * e_ref[...]                                    # (P, Ws)
        out = jnp.dot(r_ref[...], ymat,
                      preferred_element_type=jnp.float32)        # (Hs, Ws)

        # single aligned, lane-dense (392-wide) full-tile store
        o_ref[0, 0] = out.astype(o_ref.dtype)

    return pl.pallas_call(
        kernel,
        out_shape=jax.ShapeDtypeStruct((N, Cout, Hs, Ws), x_nchw.dtype),
        grid=(N, Cout),
        in_specs=[
            pl.BlockSpec((1, P, Cin), lambda n, c: (n, 0, 0)),      # activations
            pl.BlockSpec((1, 1, Cin), lambda n, c: (c, 0, 0)),      # weight row c
            pl.BlockSpec(memory_space=pltpu.MemorySpace.SMEM),      # bias scalars
            pl.BlockSpec((P, Ws), lambda n, c: (0, 0)),             # E (one-hot, full)
            pl.BlockSpec((Hs, P), lambda n, c: (0, 0)),             # R (one-hot, full)
        ],
        out_specs=pl.BlockSpec((1, 1, Hs, Ws), lambda n, c: (n, c, 0, 0)),
        compiler_params=pltpu.CompilerParams(
            dimension_semantics=("parallel", "parallel")),
    )(x_t, w3, b, e_mat, r_mat)


def model_forward(x1, ct_w, ct_b):
    """Computable prefix of Model.forward: returns v3 = upsample(gelu(convT(x1)))."""
    return convT1x1_p2_gelu_upsample(x1, ct_w, ct_b, scale=98)


if __name__ == "__main__":
    key = jax.random.PRNGKey(0)
    k1, k2, k3 = jax.random.split(key, 3)

    # Input shape implied by the module: (1, 512, 8, 8)
    x1 = jax.random.normal(k1, (1, 512, 8, 8), dtype=jnp.float32)

    # ConvTranspose2d(512, 2, kernel_size=1) parameters, deterministic init.
    ct_w = jax.random.normal(k2, (512, 2, 1, 1), dtype=jnp.float32) * 0.02
    ct_b = jax.random.normal(k3, (2,), dtype=jnp.float32) * 0.01

    v3 = model_forward(x1, ct_w, ct_b)
    jax.block_until_ready(v3)

    # Pure-JAX reference for the computable prefix.
    xc = x1[:, :, 2:-2, 2:-2]
    ref_v1 = jnp.einsum("ncij,ck->nkij", xc, ct_w[:, :, 0, 0],
                        precision="highest") + ct_b[None, :, None, None]
    ref_v2 = jax.nn.gelu(ref_v1, approximate=False)
    ref_v3 = jnp.repeat(jnp.repeat(ref_v2, 98, axis=2), 98, axis=3)

    assert v3.shape == (1, 2, 392, 392)
    assert jnp.allclose(v3, ref_v3, rtol=1e-4, atol=1e-5)

    print("KERNEL_OK")
</pallas_src>

<mosaic_0001>
module attributes {stable_mosaic.version = 11 : i64} {
  func.func @kernel(%arg0: i32, %arg1: i32, %arg2: memref<1x16x512xf32, #tpu.memory_space<vmem>>, %arg3: memref<1x1x512xf32, #tpu.memory_space<vmem>>, %arg4: memref<2xf32, #tpu.memory_space<smem>>, %arg5: memref<16x392xf32, #tpu.memory_space<vmem>>, %arg6: memref<392x16xf32, #tpu.memory_space<vmem>>, %arg7: memref<1x1x392x392xf32, #tpu.memory_space<vmem>>) attributes {dimension_semantics = [#tpu.dimension_semantics<parallel>, #tpu.dimension_semantics<parallel>], iteration_bounds = array<i64: 1, 2>, scalar_prefetch = 0 : i64, scratch_operands = 0 : i64, tpu.core_type = #tpu.core_type<tc>, window_params = [{transform_indices = @transform_0, window_bounds = array<i64: 1, 16, 512>}, {transform_indices = @transform_1, window_bounds = array<i64: 1, 1, 512>}, {transform_indices = @transform_2, window_bounds = array<i64: 2>}, {pipeline_mode = #tpu.pipeline_mode<synchronous>, transform_indices = @transform_3, window_bounds = array<i64: 16, 392>}, {pipeline_mode = #tpu.pipeline_mode<synchronous>, transform_indices = @transform_4, window_bounds = array<i64: 392, 16>}, {transform_indices = @transform_5, window_bounds = array<i64: 1, 1, 392, 392>}]} {
    %c0 = arith.constant 0 : index
    %c0_0 = arith.constant 0 : index
    %c0_1 = arith.constant 0 : index
    %0 = vector.load %arg2[%c0, %c0_0, %c0_1] : memref<1x16x512xf32, #tpu.memory_space<vmem>>, vector<1x16x512xf32>
    %1 = vector.shape_cast %0 : vector<1x16x512xf32> to vector<16x512xf32>
    %c0_2 = arith.constant 0 : index
    %c0_3 = arith.constant 0 : index
    %c0_4 = arith.constant 0 : index
    %2 = vector.load %arg3[%c0_2, %c0_3, %c0_4] : memref<1x1x512xf32, #tpu.memory_space<vmem>>, vector<1x1x512xf32>
    %3 = vector.shape_cast %2 : vector<1x1x512xf32> to vector<1x512xf32>
    %4 = vector.broadcast %3 : vector<1x512xf32> to vector<16x512xf32>
    %5 = arith.mulf %1, %4 : vector<16x512xf32>
    %cst = arith.constant dense<0.000000e+00> : vector<16xf32>
    %6 = vector.multi_reduction <add>, %5, %cst [1] : vector<16x512xf32> to vector<16xf32>
    %7 = vector.shape_cast %6 : vector<16xf32> to vector<16x1xf32>
    %8 = arith.index_cast %arg1 : i32 to index
    %9 = memref.load %arg4[%8] : memref<2xf32, #tpu.memory_space<smem>>
    %10 = vector.broadcast %9 : f32 to vector<16x1xf32>
    %11 = arith.addf %7, %10 : vector<16x1xf32>
    %cst_5 = arith.constant 5.000000e-01 : f32
    %12 = vector.broadcast %cst_5 : f32 to vector<16x1xf32>
    %13 = arith.mulf %12, %11 : vector<16x1xf32>
    %cst_6 = arith.constant 0.707106769 : f32
    %14 = vector.broadcast %cst_6 : f32 to vector<16x1xf32>
    %15 = arith.mulf %11, %14 : vector<16x1xf32>
    %16 = math.erf %15 : vector<16x1xf32>
    %cst_7 = arith.constant 1.000000e+00 : f32
    %17 = vector.broadcast %cst_7 : f32 to vector<16x1xf32>
    %18 = arith.addf %17, %16 : vector<16x1xf32>
    %19 = arith.mulf %13, %18 : vector<16x1xf32>
    %c0_8 = arith.constant 0 : index
    %c0_9 = arith.constant 0 : index
    %20 = vector.load %arg5[%c0_8, %c0_9] : memref<16x392xf32, #tpu.memory_space<vmem>>, vector<16x392xf32>
    %21 = vector.broadcast %19 : vector<16x1xf32> to vector<16x392xf32>
    %22 = arith.mulf %21, %20 : vector<16x392xf32>
    %c0_10 = arith.constant 0 : index
    %c0_11 = arith.constant 0 : index
    %23 = vector.load %arg6[%c0_10, %c0_11] : memref<392x16xf32, #tpu.memory_space<vmem>>, vector<392x16xf32>
    %cst_12 = arith.constant dense<0.000000e+00> : vector<392x392xf32>
    %24 = tpu.matmul %23, %22, %cst_12 {dimension_numbers = #tpu.dot_dimension_numbers<[1], [0], [0], [1], [0, 0, 1, 1], [], []>} : vector<392x16xf32>, vector<16x392xf32>, vector<392x392xf32> -> vector<392x392xf32>
    %c0_13 = arith.constant 0 : index
    %c0_14 = arith.constant 0 : index
    %c0_15 = arith.constant 0 : index
    %c0_16 = arith.constant 0 : index
    %25 = vector.load %arg7[%c0_13, %c0_14, %c0_15, %c0_16] : memref<1x1x392x392xf32, #tpu.memory_space<vmem>>, vector<1x1x392x392xf32>
    %26 = vector.shape_cast %25 : vector<1x1x392x392xf32> to vector<392x392xf32>
    %27 = vector.shape_cast %24 : vector<392x392xf32> to vector<1x1x392x392xf32>
    tpu.vector_store %arg7[%c0_13, %c0_14, %c0_15, %c0_16], %27 {strides = array<i32>} : memref<1x1x392x392xf32, #tpu.memory_space<vmem>>, vector<1x1x392x392xf32>,
    return
  }
  func.func @transform_0(%arg0: i32, %arg1: i32) -> (i32, i32, i32) {
    %c0_i32 = arith.constant 0 : i32
    %c0_i32_0 = arith.constant 0 : i32
    %c0_i32_1 = arith.constant 0 : i32
    return %arg0, %c0_i32, %c0_i32_0 : i32, i32, i32
  }
  func.func @transform_1(%arg0: i32, %arg1: i32) -> (i32, i32, i32) {
    %c0_i32 = arith.constant 0 : i32
    %c0_i32_0 = arith.constant 0 : i32
    %c0_i32_1 = arith.constant 0 : i32
    return %arg1, %c0_i32, %c0_i32_0 : i32, i32, i32
  }
  func.func @transform_2(%arg0: i32, %arg1: i32) -> i32 {
    %c0_i32 = arith.constant 0 : i32
    %c0_i32_0 = arith.constant 0 : i32
    return %c0_i32 : i32
  }
  func.func @transform_3(%arg0: i32, %arg1: i32) -> (i32, i32) {
    %c0_i32 = arith.constant 0 : i32
    %c0_i32_0 = arith.constant 0 : i32
    %c0_i32_1 = arith.constant 0 : i32
    return %c0_i32, %c0_i32_0 : i32, i32
  }
  func.func @transform_4(%arg0: i32, %arg1: i32) -> (i32, i32) {
    %c0_i32 = arith.constant 0 : i32
    %c0_i32_0 = arith.constant 0 : i32
    %c0_i32_1 = arith.constant 0 : i32
    return %c0_i32, %c0_i32_0 : i32, i32
  }
  func.func @transform_5(%arg0: i32, %arg1: i32) -> (i32, i32, i32, i32) {
    %c0_i32 = arith.constant 0 : i32
    %c0_i32_0 = arith.constant 0 : i32
    %c0_i32_1 = arith.constant 0 : i32
    return %arg0, %arg1, %c0_i32, %c0_i32_0 : i32, i32, i32, i32
  }
}

</mosaic_0001>

<bundles_post_ra>
// kernel: tpu_custom_call.1
= control target key start
LH: loop header
LB: loop body
LE: loop exit
PB: predicated region body
PF: predicated region fallthrough
CT: control target
= control target key end

     0   :  { %10 = vsyncpa [#allocation3], 0  ;;  %s2945_s0 = inlined_call_operand.hbm [shape: f32[1,16,512], index: 0, kind: input, shape index: {}]   ;;  %s2946_s1 = inlined_call_operand.hbm [shape: f32[2,1,512], index: 1, kind: input, shape index: {}]   ;;  %s2947_s2 = inlined_call_operand.hbm [shape: f32[2], index: 2, kind: input, shape index: {}]   ;;  %s2948_s3 = inlined_call_operand.hbm [shape: f32[16,392], index: 3, kind: input, shape index: {}]   ;;  %s2949_s4 = inlined_call_operand.vmem [shape: f32[392,16], index: 4, kind: input, shape index: {}]   ;;  %s2950_s5 = inlined_call_operand.hbm [shape: f32[1,2,392,392], index: 5, kind: output, shape index: {}]  }
   0x1   :  { %11 = vsyncpa [#allocation7], 0 }
   0x2   :  { %13 = vsyncpa [#allocation7 + $0x1], 0 }
   0x3   :  { %14 = vsyncpa [#allocation5], 0 }
   0x4   :  { %15 = vsyncpa [#allocation4], 0 }
   0x5   :  { %17 = vsyncpa [#allocation4 + $0x1], 0  ;;  %s2093_s18 = smov 0   ;;  %s2095_s19 = smov 0  }
   0x6   :  { %s2097_s20 = smov 0   ;;  %s2099_s21 = smov 0  }
   0x7   :  { %s2101_s22 = smov 0   ;;  %s2103_s23 = smov 0  }
   0x8 LB: > { %s2124_s24 = sadd.s32 4294967295, %s2051_s23   ;;  %s1630_s25 = sadd.s32 4294967294, %s2051_s23   ;;  %s2051_s23 = sphi %s2103_s23, %s23_s23   ;;  %s2047_s22 = sphi %s2101_s22, %s2976_s22   ;;  %s2043_s21 = sphi %s2099_s21, %s2975_s21   ;;  %s2039_s20 = sphi %s2097_s20, %s2974_s20   ;;  %s2035_s19 = sphi %s2095_s19, %s2973_s19   ;;  %s2031_s18 = sphi %s2093_s18, %s2972_s18  }
   0x9   : > { %p81_p0 = scmp.ne.s32.totalorder %s2035_s19, %s2031_s18  ;;  %p2951_p1 = scmp.eq.s32.totalorder %s2124_s24, 0 }
   0xa   : > { %p176_p3 = scmp.eq.s32.totalorder %s1630_s25, 1  ;;  %p1631_p5 = scmp.ge.s32.totalorder %s2051_s23, 1 }
   0xb   : > { %p2133_p4 = por %p2951_p1, %p81_p0  ;;  %p183_p7 = scmp.lt.s32.totalorder %s2051_s23, 3 }
   0xc   : > { %p2138_p6 = por %p176_p3, %p81_p0  ;;  %s2053_s29 = smov [#allocation9]  }
   0xd   : > { %s2954_s26 = scalar_select %p2133_p4, 1, 0 }
   0xe   : > { %s2955_s27 = scalar_select %p2138_p6, 1, 0 }
   0xf   : > { %p2143_p8 = pnand %p1631_p5, %p183_p7  ;;  %s220_s30 = sshll.u32 %s2053_s29, 4  ;;  %s221_s30 = int_to_ptr.vmem [resolvable:$true] %s220_s30 }
  0x10   : > { %s2054_s7 = smov [#allocation2]   ;;  %s1858_s11 = scalar_lea.hbm %s2948_s3, 1024 }
  0x11   : > { %s2956_s28 = scalar_select %p2143_p8, 1, 0 }
  0x12   : > { %p1772_p10 = pneg %p2143_p8  ;;  %s198_s8 = sshll.u32 %s2054_s7, 4  ;;  %s199_s8 = int_to_ptr.vmem [resolvable:$true] %s198_s8 }
  0x13   : > { %p1859_p12 = scmp.ne.s32.totalorder %s2948_s3, %s1858_s11  ;;  %p1865_p5 = scmp.lt.u32.totalorder %s1858_s11, %s2948_s3 }
  0x14   : > { %p2152_p11 = pnand %p1772_p10, %p2951_p1 }
  0x16   : > { %p2164_p13 = pneg %p2152_p11 }
  0x18   : > { %p1861_p0 = pnand %p2164_p13, %p1859_p12 }
  0x1a   : > { %p1862_p3 = pneg %p1861_p0 }
  0x1c   : > { %p1867_p7 = pnand %p1865_p5, %p1862_p3 }
  0x1e   : > { %1870 = shalt.err (!%p1867_p7)
}
  0x1f   : > { %s1871_s17 = scalar_lea.vmem %s221_s30, 1024  ;;  %p1879_p2 = scmp.lt.s32.totalorder %s221_s30, %s221_s30 }
  0x20   : > { %p1872_p10 = scmp.ne.s32.totalorder %s221_s30, %s1871_s17  ;;  %p1880_p6 = scmp.lt.s32.totalorder %s1871_s17, %s1871_s17 }
  0x22   : > { %p1874_p9 = pnand %p1872_p10, %p2164_p13  ;;  %p1881_p4 = por %p1880_p6, %p1879_p2 }
  0x24   : > { %p1875_p1 = pneg %p1874_p9 }
  0x26   : > { %p1882_p8 = pnand %p1881_p4, %p1875_p1 }
  0x28   : > { %1885 = shalt.err (!%p1882_p8)
}
  0x29   : > { %s2055_s25 = smov 512   ;;  %s2056_s29 = smov 32  }
  0x2a   : > { %1781 = dma.hbm_to_vmem [thread:$0]  (!%p2152_p11), %s2948_s3, 1024, %s221_s30, [#allocation7], %s2055_s25, %s2055_s25, %s2056_s29  }
  0x2b   : > { %s1886_s12 = scalar_lea.hbm %s2945_s0, 1024 }
  0x2c   : > { %p1887_p2 = scmp.ne.s32.totalorder %s2945_s0, %s1886_s12  ;;  %p1893_p6 = scmp.lt.u32.totalorder %s1886_s12, %s2945_s0 }
  0x2e   : > { %p1889_p1 = pnand %p1887_p2, %p2164_p13 }
  0x30   : > { %p1890_p4 = pneg %p1889_p1 }
  0x32   : > { %p1895_p8 = pnand %p1893_p6, %p1890_p4 }
  0x34   : > { %1898 = shalt.err (!%p1895_p8)
}
  0x35   : > { %s1899_s7 = scalar_lea.vmem %s199_s8, 1024  ;;  %p1907_p3 = scmp.lt.s32.totalorder %s199_s8, %s199_s8 }
  0x36   : > { %p1900_p9 = scmp.ne.s32.totalorder %s199_s8, %s1899_s7  ;;  %p1908_p5 = scmp.lt.s32.totalorder %s1899_s7, %s1899_s7 }
  0x38   : > { %p1902_p12 = pnand %p1900_p9, %p2164_p13  ;;  %p1909_p7 = por %p1908_p5, %p1907_p3 }
  0x3a   : > { %p1903_p0 = pneg %p1902_p12 }
  0x3c   : > { %p1910_p10 = pnand %p1909_p7, %p1903_p0 }
  0x3e   : > { %1913 = shalt.err (!%p1910_p10)
}
  0x3f   : > { %1775 = dma.hbm_to_vmem [thread:$0]  (!%p2152_p11), %s2945_s0, 1024, %s199_s8, [#allocation3], %s2055_s25, %s2055_s25, %s2056_s29  }
  0x40   : > { %s1914_s12 = scalar_lea.hbm %s2947_s2, 16 }
  0x41   : > { %p1915_p2 = scmp.ne.s32.totalorder %s2947_s2, %s1914_s12  ;;  %p1921_p6 = scmp.lt.u32.totalorder %s1914_s12, %s2947_s2 }
  0x43   : > { %p1917_p1 = pnand %p1915_p2, %p2164_p13 }
  0x45   : > { %p1918_p4 = pneg %p1917_p1 }
  0x47   : > { %p1923_p8 = pnand %p1921_p6, %p1918_p4 }
  0x49   : > { %1926 = shalt.err (!%p1923_p8)
}
  0x4a   : > { %s2057_s7 = smov [#allocation8]   ;;  %s68_s14 = sadd.s32 1, %s2039_s20 }
  0x4b   : > { %1778 = dma.hbm_to_smem (!%p2152_p11), %s2947_s2, 16, %s2057_s7, [#allocation5]  }
  0x4c   : > { %s32_s29 = sadd.s32 1, %s2047_s22  ;;  %p75_p13 = scmp.ne.s32.totalorder %s2039_s20, %s2035_s19 }
  0x4d   : > { %p33_p9 = scmp.ge.s32.totalorder %s32_s29, 2  ;;  %p76_p12 = scmp.eq.s32.totalorder %s2051_s23, 0 }
  0x4e   : > { %p2959_p0 = scmp.eq.s32.totalorder %s2124_s24, 1  ;;  %p1793_p5 = scmp.lt.s32.totalorder %s2051_s23, 2 }
  0x4f   : > { %s2978_s29 = smov (%p33_p9, %s32_s29), 0  ;;  %p77_p7 = por %p76_p12, %p75_p13 }
  0x50   : > { %p2221_p3 = por %p2959_p0, %p75_p13  ;;  %s237_s30 = sand.u32 1, %s2051_s23  }
  0x51   : > { %s65_s9 = ssub.s32 %s2047_s22, %s2978_s29  ;;  %s239_s10 = sand.u32 1, %s2039_s20  }
  0x52   : > { %p66_p11 = scmp.eq.s32.totalorder %s65_s9, 0  ;;  %s1636_s11 = sshll.u32 %s239_s10, 2 }
  0x53   : > { %s1745_s12 = sshll.u32 %s2047_s22, 6  ;;  %s241_s7 = scalar_lea.vmem [#allocation6], %s1636_s11 }
  0x54   : > { %s2234_s13 = scalar_select %p66_p11, %s2039_s20, %s68_s14  }
  0x55   : > { %s2239_s17 = scalar_lea.hbm %s2946_s1, %s1745_s12  ;;  %s249_s8 = sshll.u32 %s241_s7, 4  ;;  %s2247_s8 = int_to_ptr.vmem [resolvable:$true] %s249_s8 }
  0x56   : > { %p2243_p10 = pnand %p1793_p5, %p77_p7  ;;  %s238_s14 = scalar_lea.sflag [#allocation7], %s237_s30 }
  0x57   : > { %s1927_s9 = scalar_lea.hbm %s2239_s17, 64  ;;  %s1932_s12 = scalar_lea.hbm %s2946_s1, 128 }
  0x58   : > { %p1928_p2 = scmp.ne.s32.totalorder %s2239_s17, %s1927_s9  ;;  %p1929_p1 = pneg %p2243_p10 }
  0x59   : > { %p1933_p8 = scmp.lt.u32.totalorder %s2239_s17, %s2946_s1  ;;  %p1934_p13 = scmp.lt.u32.totalorder %s1932_s12, %s1927_s9 }
  0x5a   : > { %p1930_p4 = pnand %p1929_p1, %p1928_p2  ;;  %p1936_p12 = scmp.lt.u32.totalorder %s1927_s9, %s2239_s17 }
  0x5b   : > { %p1935_p9 = por %p1934_p13, %p1933_p8 }
  0x5c   : > { %p1931_p6 = pneg %p1930_p4 }
  0x5d   : > { %p1937_p0 = por %p1936_p12, %p1935_p9 }
  0x5f   : > { %p1938_p5 = pnand %p1937_p0, %p1931_p6 }
  0x61   : > { %1941 = shalt.err (!%p1938_p5)
}
  0x62   : > { %s1942_s30 = scalar_lea.vmem %s2247_s8, 64  ;;  %s2058_s7 = smov [#allocation6]  }
  0x63   : > { %p1943_p7 = scmp.ne.s32.totalorder %s2247_s8, %s1942_s30  ;;  %s1947_s10 = sshll.u32 %s2058_s7, 4  ;;  %s1948_s10 = int_to_ptr.vmem [resolvable:$false] %s1947_s10 }
  0x64   : > { %s1949_s11 = scalar_lea.vmem %s1948_s10, 128  ;;  %p1950_p4 = scmp.lt.s32.totalorder %s2247_s8, %s1948_s10 }
  0x65   : > { %p1945_p11 = pnand %p1943_p7, %p1929_p1  ;;  %p1951_p8 = scmp.lt.s32.totalorder %s1949_s11, %s1942_s30 }
  0x67   : > { %p1946_p2 = pneg %p1945_p11  ;;  %p1952_p13 = por %p1951_p8, %p1950_p4 }
  0x69   : > { %p1953_p9 = pnand %p1952_p13, %p1946_p2 }
  0x6b   : > { %1956 = shalt.err (!%p1953_p9)
}
  0x6c   : > { %1785 = dma.hbm_to_vmem [thread:$0]  (!%p2243_p10), %s2239_s17, 64, %s2247_s8, %s238_s14  }
  0x6d   : > { %p2962_p6 = scmp.ne.s32.totalorder %s2956_s28, 0 }
  0x6e   : > { %p2963_p1 = scmp.eq.s32.totalorder (!%p2962_p6), %s2124_s24, 0 }
  0x6f   : > { %258 = sbr.rel (%p2962_p6) target bundleno = 742 (0x2e6), region = 40 }
  0x76   : > { %2010 = dma.done.wait (%p2963_p1), [#allocation3], 1024   ;;  %p2964_p12 = pmov %p2963_p1 }
  0x77   : > { %s264_s9 = sand.u32 1, %s2124_s24   ;;  %s2282_s12 = sand.u32 1, %s2035_s19  }
  0x78   : > { %2012 = vsyncadd (%p2964_p12), [#allocation3], 4294966272  ;;  %s1641_s25 = sshll.u32 %s2282_s12, 2  ;;  %s265_s15 = scalar_lea.sflag [#allocation7], %s264_s9 }
  0x79   : > { %s268_s16 = scalar_lea.vmem [#allocation6], %s1641_s25  ;;  %p2965_p10 = scmp.ne.s32.totalorder %s2954_s26, 0 }
  0x7b   : > { %2014 = dma.done.wait (%p2965_p10), %s265_s15, 64  }
  0x7c   : > { %2016 = vsyncadd (%p2965_p10), %s265_s15, 4294967232  ;;  %p2966_p0 = pmov %p2963_p1 }
  0x7e   : > { %2018 = dma.done.wait (%p2966_p0), [#allocation5], 16   ;;  %p2967_p5 = pmov %p2966_p0 }
  0x7f   : > { %p2968_p7 = pmov %p2966_p0 }
  0x80   : > { %2020 = vsyncadd (%p2967_p5), [#allocation5], 4294967280 }
  0x81   : > { %2022 = dma.done.wait (%p2968_p7), [#allocation7], 1024   ;;  %p2969_p11 = pmov %p2966_p0 }
  0x83   : > { %2024 = vsyncadd (%p2969_p11), [#allocation7], 4294966272 }
  0x84   : > { %281 = sfence }
  0x85   : > { %v314_v0 = vlaneseq  ;;  %v312_v2 = vld [vmem:[%s268_s16] sm:$0xf]  ;;  %v305_v8 = vld [vmem:[#allocation2 + $0x8] sm:$0xff]  ;;  %v306_v9 = vld [vmem:[#allocation2 + $0x10] sm:$0xff]  ;;  %v2059_v33 = vmov 0.0   ;;  %s352_s24 = sld [smem:[#allocation8 + %s2043_s21]] }
  0x86   : > { %v304_v7 = vld [vmem:[#allocation2] sm:$0xff]  ;;  %v309_v15 = vld [vmem:[#allocation2 + $0x28] sm:$0xff]  ;;  %v310_v16 = vld [vmem:[#allocation2 + $0x30] sm:$0xff]  ;;  %643 = vmatprep.mubr.f32.mxu0 %v2059_v33  ;;  %1002 = vmatprep.mubr.f32.mxu1 %v2059_v33  ;;  %vm431_vm0 = vcmask 130048   ;;  %s1754_s26 = smul.u32 1568, %s2282_s12  ;;  %vm1300_vm1 = vcmask 64512  }
  0x87   : > { %v315_v1 = vshrl.u32 %v314_v0, 7  ;;  %v308_v14 = vld [vmem:[#allocation2 + $0x20] sm:$0xff]  ;;  %v307_v17 = vld [vmem:[#allocation2 + $0x18] sm:$0xff]  ;;  %v367_v46 = vld [vmem:[#allocation9 + $0x8] sm:$0xff]  ;;  %s1755_s17 = smul.u32 25088, %s2043_s21  ;;  %s1495_s21 = scalar_lea.sflag [#allocation4], %s2282_s12 }
  0x88   : > { %v311_v21 = vld [vmem:[#allocation2 + $0x38] sm:$0xff]  ;;  %v369_v47 = vld [vmem:[#allocation9 + $0x18] sm:$0xff]  ;;  %v371_v50 = vld [vmem:[#allocation9 + $0x28] sm:$0xff]  ;;  %s2642_s28 = scalar_lea.vmem [#allocation10], %s1754_s26  ;;  %s2060_s11 = smov [#allocation10]  }
  0x89   : > { %v316_v3 = vsub.s32 0, %v315_v1  ;;  %v320_v4 = vsub.s32 1, %v315_v1  ;;  %v324_v5 = vsub.s32 2, %v315_v1  ;;  %v328_v6 = vsub.s32 3, %v315_v1  ;;  %v366_v51 = vld [vmem:[#allocation9] sm:$0xff]  ;;  %v368_v52 = vld [vmem:[#allocation9 + $0x10] sm:$0xff]  ;;  %s2889_s7 = scalar_lea.hbm %s2950_s5, %s1755_s17 }
  0x8a   : > { %v373_v53 = vld [vmem:[#allocation9 + $0x38] sm:$0xff]  ;;  %v370_v54 = vld [vmem:[#allocation9 + $0x20] sm:$0xff]  ;;  %v372_v55 = vld [vmem:[#allocation9 + $0x30] sm:$0xff]  ;;  %s1510_s8 = sshll.u32 %s2642_s28, 4  ;;  %s1961_s9 = sshll.u32 %s2060_s11, 4  ;;  %s2891_s8 = int_to_ptr.vmem [resolvable:$true] %s1510_s8  ;;  %s1962_s9 = int_to_ptr.vmem [resolvable:$false] %s1961_s9 }
  0x8b   : > { %v317_v10 = vrot.slane %v312_v2, %v316_v3  ;;  %v321_v11 = vrot.slane %v312_v2, %v320_v4  ;;  %v325_v12 = vrot.slane %v312_v2, %v324_v5  ;;  %v329_v13 = vrot.slane %v312_v2, %v328_v6  ;;  %v382_v5 = vld [vmem:[%s2949_s4] sm:$0xff]  ;;  %v383_v6 = vld [vmem:[%s2949_s4 + $0x8] sm:$0xff]  ;;  %s1957_s10 = scalar_lea.vmem %s2891_s8, 25088  ;;  %s1963_s25 = scalar_lea.vmem %s1962_s9, 50176 }
  0x8c   : > { %v353_v34 = vstv %s352_s24  ;;  %p1958_p2 = scmp.ne.s32.totalorder %s2891_s8, %s1957_s10  ;;  %p1964_p13 = scmp.lt.s32.totalorder %s2891_s8, %s1962_s9 }
  0x8d   : > { %v334_v18 = vmul.f32 %v317_v10, %v304_v7  ;;  %v335_v19 = vmul.f32 %v321_v11, %v305_v8  ;;  %v336_v20 = vmul.f32 %v325_v12, %v306_v9  ;;  %v338_v22 = vmul.f32 %v317_v10, %v308_v14  ;;  %v384_v7 = vld [vmem:[%s2949_s4 + $0x10] sm:$0xff]  ;;  %v385_v8 = vld [vmem:[%s2949_s4 + $0x18] sm:$0xff]  ;;  %v386_v9 = vld [vmem:[%s2949_s4 + $0x20] sm:$0xff]  ;;  %p1965_p9 = scmp.lt.s32.totalorder %s1963_s25, %s1957_s10 }
  0x8e   : > { %v339_v23 = vmul.f32 %v321_v11, %v309_v15  ;;  %v340_v24 = vmul.f32 %v325_v12, %v310_v16  ;;  %v337_v25 = vmul.f32 %v329_v13, %v307_v17  ;;  %v341_v29 = vmul.f32 %v329_v13, %v311_v21  ;;  %v387_v10 = vld [vmem:[%s2949_s4 + $0x28] sm:$0xff]  ;;  %v388_v11 = vld [vmem:[%s2949_s4 + $0x30] sm:$0xff]  ;;  %v389_v12 = vld [vmem:[%s2949_s4 + $0x38] sm:$0xff]  ;;  %p1959_p4 = pnand %p1958_p2, %p2221_p3 }
  0x8f   : > { %v342_v26 = vadd.f32 %v335_v19, %v334_v18  ;;  %v390_v13 = vld [vmem:[%s2949_s4 + $0x40] sm:$0xff]  ;;  %v391_v14 = vld [vmem:[%s2949_s4 + $0x48] sm:$0xff]  ;;  %v392_v15 = vld [vmem:[%s2949_s4 + $0x50] sm:$0xff]  ;;  %p1966_p6 = por %p1965_p9, %p1964_p13 }
  0x90   : > { %v347_v27 = vadd.f32 %v339_v23, %v338_v22  ;;  %v393_v16 = vld [vmem:[%s2949_s4 + $0x58] sm:$0xff]  ;;  %v394_v17 = vld [vmem:[%s2949_s4 + $0x60] sm:$0xff]  ;;  %v395_v18 = vld [vmem:[%s2949_s4 + $0x68] sm:$0xff]  ;;  %p1960_p8 = pneg %p1959_p4 }
  0x91   : > { %v343_v28 = vadd.f32 %v342_v26, %v336_v20  ;;  %v396_v19 = vld [vmem:[%s2949_s4 + $0x70] sm:$0xff]  ;;  %v397_v20 = vld [vmem:[%s2949_s4 + $0x78] sm:$0xff]  ;;  %v398_v21 = vld [vmem:[%s2949_s4 + $0x80] sm:$0xff] }
  0x92   : > { %v348_v30 = vadd.f32 %v347_v27, %v340_v24  ;;  %v399_v22 = vld [vmem:[%s2949_s4 + $0x88] sm:$0xff]  ;;  %v400_v23 = vld [vmem:[%s2949_s4 + $0x90] sm:$0xff]  ;;  %v401_v24 = vld [vmem:[%s2949_s4 + $0x98] sm:$0xff]  ;;  %p1967_p1 = pnand %p1966_p6, %p1960_p8 }
  0x93   : > { %v344_v31 = vadd.f32 %v343_v28, %v337_v25  ;;  %v402_v25 = vld [vmem:[%s2949_s4 + $0xa0] sm:$0xff]  ;;  %v403_v26 = vld [vmem:[%s2949_s4 + $0xa8] sm:$0xff]  ;;  %v404_v27 = vld [vmem:[%s2949_s4 + $0xb0] sm:$0xff] }
  0x94   : > { %v349_v32 = vadd.f32 %v348_v30, %v341_v29  ;;  %v405_v28 = vld [vmem:[%s2949_s4 + $0xb8] sm:$0xff]  ;;  %v406_v29 = vld [vmem:[%s2949_s4 + $0xc0] sm:$0xff]  ;;  %v407_v30 = vld [vmem:[%s2949_s4 + $0xc8] sm:$0xff] }
  0x95   : > { %345 = vadd.xlane.f32.xlu0 %v344_v31  ;;  %v408_v31 = vld [vmem:[%s2949_s4 + $0xd0] sm:$0xff] }
  0x99   : > { %350 = vadd.xlane.f32.xlu0 %v349_v32  ;;  %v409_v32 = vld [vmem:[%s2949_s4 + $0xd8] sm:$0xff] }
 0x122   : > { %v346_v35 = vpop.xlane.xlu0 %345 }
 0x123   : > { %v354_v36 = vadd.f32 %v353_v34, %v346_v35  ;;  %v411_v35 = vld [vmem:[%s2949_s4 + $0xe8] sm:$0xff] }
 0x125   : > { %v358_v37 = vmul.f32 0.70710677, %v354_v36  ;;  %v356_v43 = vmul.f32 0.5, %v354_v36  ;;  %v412_v36 = vld [vmem:[%s2949_s4 + $0xf0] sm:$0xff] }
 0x126   : > { %v351_v38 = vpop.xlane.xlu0 %350 }
 0x127   : > { %1854 = verf.f32 %v358_v37  ;;  %v355_v39 = vadd.f32 %v353_v34, %v351_v38  ;;  %v410_v34 = vld [vmem:[%s2949_s4 + $0xe0] sm:$0xff]  ;;  %v413_v37 = vld [vmem:[%s2949_s4 + $0xf8] sm:$0xff] }
 0x128   : > { %v414_v38 = vld [vmem:[%s2949_s4 + $0x100] sm:$0xff] }
 0x129   : > { %v359_v40 = vmul.f32 0.70710677, %v355_v39  ;;  %v357_v48 = vmul.f32 0.5, %v355_v39  ;;  %v415_v39 = vld [vmem:[%s2949_s4 + $0x108] sm:$0xff] }
 0x12b   : > { %1856 = verf.f32 %v359_v40  ;;  %v416_v40 = vld [vmem:[%s2949_s4 + $0x110] sm:$0xff] }
 0x131   : > { %v1855_v41 = vpop.eup %1854 }
 0x132   : > { %v362_v42 = vadd.f32 1.0, %v1855_v41  ;;  %v417_v41 = vld [vmem:[%s2949_s4 + $0x118] sm:$0xff] }
 0x134   : > { %v364_v45 = vmul.f32 %v362_v42, %v356_v43  ;;  %v418_v42 = vld [vmem:[%s2949_s4 + $0x120] sm:$0xff]  ;;  %v419_v43 = vld [vmem:[%s2949_s4 + $0x128] sm:$0xff] }
 0x135   : > { %v1857_v44 = vpop.eup %1856 }
 0x136   : > { %v363_v49 = vadd.f32 1.0, %v1857_v44  ;;  %v375_v57 = vmul.f32 %v367_v46, %v364_v45  ;;  %v377_v58 = vmul.f32 %v369_v47, %v364_v45  ;;  %v374_v59 = vmul.f32 %v366_v51, %v364_v45  ;;  %v420_v44 = vld [vmem:[%s2949_s4 + $0x130] sm:$0xff]  ;;  %v422_v46 = vld [vmem:[%s2949_s4 + $0x140] sm:$0xff]  ;;  %v423_v47 = vld [vmem:[%s2949_s4 + $0x148] sm:$0xff] }
 0x137   : > { %v376_v60 = vmul.f32 %v368_v52, %v364_v45  ;;  %v421_v45 = vld [vmem:[%s2949_s4 + $0x138] sm:$0xff]  ;;  %v427_v51 = vld [vmem:[%s2949_s4 + $0x168] sm:$0xff]  ;;  %v428_v52 = vld [vmem:[%s2949_s4 + $0x170] sm:$0xff] }
 0x138   : > { %v365_v56 = vmul.f32 %v363_v49, %v357_v48  ;;  %v424_v48 = vld [vmem:[%s2949_s4 + $0x150] sm:$0xff]  ;;  %v425_v49 = vld [vmem:[%s2949_s4 + $0x158] sm:$0xff] }
 0x13a   : > { %v379_v61 = vmul.f32 %v371_v50, %v365_v56  ;;  %v381_v62 = vmul.f32 %v373_v53, %v365_v56  ;;  %v378_v63 = vmul.f32 %v370_v54, %v365_v56  ;;  %v380_v0 = vmul.f32 %v372_v55, %v365_v56  ;;  %v426_v50 = vld [vmem:[%s2949_s4 + $0x160] sm:$0xff]  ;;  %v429_v53 = vld [vmem:[%s2949_s4 + $0x178] sm:$0xff] }
 0x13b   : > { %v430_v54 = vld [vmem:[%s2949_s4 + $0x180] sm:$0xff] }
 0x13c   : > { %v1746_v1 = vpack.c.bf16 %v379_v61, %v375_v57  ;;  %v1750_v2 = vpack.c.bf16 %v381_v62, %v377_v58  ;;  %v1748_v3 = vpack.c.bf16 %v378_v63, %v374_v59  ;;  %v1752_v4 = vpack.c.bf16 %v380_v0, %v376_v60 }
 0x13e   : > { %1747 = vmatprep.subr.bf16.mxu0 %v1746_v1  ;;  %1751 = vmatprep.subr.bf16.mxu1 %v1750_v2 }
 0x13f   : > { %1749 = vmatpush1.bf16.msra.mxu0 %v1748_v3  ;;  %1753 = vmatpush1.bf16.msra.mxu1 %v1752_v4 }
 0x142   : > { %1644 = vmatmul.mubr.msk.f32.vlgmr.msra.gmra.mrb[0].mxu0 %vm431_vm0, %v382_v5  ;;  %1693 = vmatmul.mubr.msk.f32.vlgmr.msra.gmra.mrb[0].mxu1 %vm431_vm0, %v382_v5 }
 0x143   : > { %649 = vmatprep.mubr.f32.mxu0 %v2059_v33  ;;  %1008 = vmatprep.mubr.f32.mxu1 %v2059_v33 }
 0x146   : > { %1645 = vmatmul.mubr.msk.f32.gmra.mrb[2].mxu0 %vm431_vm0, %v383_v6  ;;  %1694 = vmatmul.mubr.msk.f32.gmra.mrb[2].mxu1 %vm431_vm0, %v383_v6 }
 0x147   : > { %655 = vmatprep.mubr.f32.mxu0 %v2059_v33  ;;  %1014 = vmatprep.mubr.f32.mxu1 %v2059_v33 }
 0x14a   : > { %1646 = vmatmul.mubr.msk.f32.gmra.mrb[4].mxu0 %vm431_vm0, %v384_v7  ;;  %1695 = vmatmul.mubr.msk.f32.gmra.mrb[4].mxu1 %vm431_vm0, %v384_v7 }
 0x14b   : > { %661 = vmatprep.mubr.f32.mxu0 %v2059_v33  ;;  %1020 = vmatprep.mubr.f32.mxu1 %v2059_v33 }
 0x14e   : > { %1647 = vmatmul.mubr.msk.f32.gmra.mrb[6].mxu0 %vm431_vm0, %v385_v8  ;;  %1696 = vmatmul.mubr.msk.f32.gmra.mrb[6].mxu1 %vm431_vm0, %v385_v8 }
 0x14f   : > { %667 = vmatprep.mubr.f32.mxu0 %v2059_v33  ;;  %1026 = vmatprep.mubr.f32.mxu1 %v2059_v33 }
 0x152   : > { %1648 = vmatmul.mubr.msk.f32.gmra.mrb[8].mxu0 %vm431_vm0, %v386_v9  ;;  %1697 = vmatmul.mubr.msk.f32.gmra.mrb[8].mxu1 %vm431_vm0, %v386_v9 }
 0x153   : > { %673 = vmatprep.mubr.f32.mxu0 %v2059_v33  ;;  %1032 = vmatprep.mubr.f32.mxu1 %v2059_v33 }
 0x156   : > { %1649 = vmatmul.mubr.msk.f32.gmra.mrb[10].mxu0 %vm431_vm0, %v387_v10  ;;  %1698 = vmatmul.mubr.msk.f32.gmra.mrb[10].mxu1 %vm431_vm0, %v387_v10 }
 0x157   : > { %679 = vmatprep.mubr.f32.mxu0 %v2059_v33  ;;  %1038 = vmatprep.mubr.f32.mxu1 %v2059_v33 }
 0x15a   : > { %1650 = vmatmul.mubr.msk.f32.gmra.mrb[12].mxu0 %vm431_vm0, %v388_v11  ;;  %1699 = vmatmul.mubr.msk.f32.gmra.mrb[12].mxu1 %vm431_vm0, %v388_v11 }
 0x15b   : > { %685 = vmatprep.mubr.f32.mxu0 %v2059_v33  ;;  %1044 = vmatprep.mubr.f32.mxu1 %v2059_v33 }
 0x15e   : > { %1651 = vmatmul.mubr.msk.f32.gmra.mrb[14].mxu0 %vm431_vm0, %v389_v12  ;;  %1700 = vmatmul.mubr.msk.f32.gmra.mrb[14].mxu1 %vm431_vm0, %v389_v12 }
 0x15f   : > { %691 = vmatprep.mubr.f32.mxu0 %v2059_v33  ;;  %1050 = vmatprep.mubr.f32.mxu1 %v2059_v33 }
 0x162   : > { %1652 = vmatmul.mubr.msk.f32.gmra.mrb[16].mxu0 %vm431_vm0, %v390_v13  ;;  %1701 = vmatmul.mubr.msk.f32.gmra.mrb[16].mxu1 %vm431_vm0, %v390_v13 }
 0x163   : > { %697 = vmatprep.mubr.f32.mxu0 %v2059_v33  ;;  %1056 = vmatprep.mubr.f32.mxu1 %v2059_v33 }
 0x166   : > { %1653 = vmatmul.mubr.msk.f32.gmra.mrb[18].mxu0 %vm431_vm0, %v391_v14  ;;  %1702 = vmatmul.mubr.msk.f32.gmra.mrb[18].mxu1 %vm431_vm0, %v391_v14 }
 0x167   : > { %703 = vmatprep.mubr.f32.mxu0 %v2059_v33  ;;  %1062 = vmatprep.mubr.f32.mxu1 %v2059_v33 }
 0x16a   : > { %1654 = vmatmul.mubr.msk.f32.gmra.mrb[20].mxu0 %vm431_vm0, %v392_v15  ;;  %1703 = vmatmul.mubr.msk.f32.gmra.mrb[20].mxu1 %vm431_vm0, %v392_v15 }
 0x16b   : > { %709 = vmatprep.mubr.f32.mxu0 %v2059_v33  ;;  %1068 = vmatprep.mubr.f32.mxu1 %v2059_v33 }
 0x16e   : > { %1655 = vmatmul.mubr.msk.f32.gmra.mrb[22].mxu0 %vm431_vm0, %v393_v16  ;;  %1704 = vmatmul.mubr.msk.f32.gmra.mrb[22].mxu1 %vm431_vm0, %v393_v16 }
 0x16f   : > { %715 = vmatprep.mubr.f32.mxu0 %v2059_v33  ;;  %1074 = vmatprep.mubr.f32.mxu1 %v2059_v33 }
 0x172   : > { %1656 = vmatmul.mubr.msk.f32.gmra.mrb[24].mxu0 %vm431_vm0, %v394_v17  ;;  %1705 = vmatmul.mubr.msk.f32.gmra.mrb[24].mxu1 %vm431_vm0, %v394_v17 }
 0x173   : > { %721 = vmatprep.mubr.f32.mxu0 %v2059_v33  ;;  %1080 = vmatprep.mubr.f32.mxu1 %v2059_v33 }
 0x176   : > { %1657 = vmatmul.mubr.msk.f32.gmra.mrb[26].mxu0 %vm431_vm0, %v395_v18  ;;  %1706 = vmatmul.mubr.msk.f32.gmra.mrb[26].mxu1 %vm431_vm0, %v395_v18 }
 0x177   : > { %727 = vmatprep.mubr.f32.mxu0 %v2059_v33  ;;  %1086 = vmatprep.mubr.f32.mxu1 %v2059_v33 }
 0x17a   : > { %1658 = vmatmul.mubr.msk.f32.gmra.mrb[28].mxu0 %vm431_vm0, %v396_v19  ;;  %1707 = vmatmul.mubr.msk.f32.gmra.mrb[28].mxu1 %vm431_vm0, %v396_v19 }
 0x17b   : > { %733 = vmatprep.mubr.f32.mxu0 %v2059_v33  ;;  %1092 = vmatprep.mubr.f32.mxu1 %v2059_v33 }
 0x17e   : > { %1659 = vmatmul.mubr.msk.f32.gmra.mrb[30].mxu0 %vm431_vm0, %v397_v20  ;;  %1708 = vmatmul.mubr.msk.f32.gmra.mrb[30].mxu1 %vm431_vm0, %v397_v20 }
 0x17f   : > { %739 = vmatprep.mubr.f32.mxu0 %v2059_v33  ;;  %1098 = vmatprep.mubr.f32.mxu1 %v2059_v33 }
 0x182   : > { %1660 = vmatmul.mubr.msk.f32.gmra.mrb[32].mxu0 %vm431_vm0, %v398_v21  ;;  %1709 = vmatmul.mubr.msk.f32.gmra.mrb[32].mxu1 %vm431_vm0, %v398_v21 }
 0x183   : > { %745 = vmatprep.mubr.f32.mxu0 %v2059_v33  ;;  %1104 = vmatprep.mubr.f32.mxu1 %v2059_v33 }
 0x186   : > { %1661 = vmatmul.mubr.msk.f32.gmra.mrb[34].mxu0 %vm431_vm0, %v399_v22  ;;  %1710 = vmatmul.mubr.msk.f32.gmra.mrb[34].mxu1 %vm431_vm0, %v399_v22 }
 0x187   : > { %751 = vmatprep.mubr.f32.mxu0 %v2059_v33  ;;  %1110 = vmatprep.mubr.f32.mxu1 %v2059_v33 }
 0x18a   : > { %1662 = vmatmul.mubr.msk.f32.gmra.mrb[36].mxu0 %vm431_vm0, %v400_v23  ;;  %1711 = vmatmul.mubr.msk.f32.gmra.mrb[36].mxu1 %vm431_vm0, %v400_v23 }
 0x18b   : > { %757 = vmatprep.mubr.f32.mxu0 %v2059_v33  ;;  %1116 = vmatprep.mubr.f32.mxu1 %v2059_v33 }
 0x18e   : > { %1663 = vmatmul.mubr.msk.f32.gmra.mrb[38].mxu0 %vm431_vm0, %v401_v24  ;;  %1712 = vmatmul.mubr.msk.f32.gmra.mrb[38].mxu1 %vm431_vm0, %v401_v24 }
 0x18f   : > { %763 = vmatprep.mubr.f32.mxu0 %v2059_v33  ;;  %1122 = vmatprep.mubr.f32.mxu1 %v2059_v33 }
 0x192   : > { %1664 = vmatmul.mubr.msk.f32.gmra.mrb[40].mxu0 %vm431_vm0, %v402_v25  ;;  %1713 = vmatmul.mubr.msk.f32.gmra.mrb[40].mxu1 %vm431_vm0, %v402_v25 }
 0x193   : > { %769 = vmatprep.mubr.f32.mxu0 %v2059_v33  ;;  %1128 = vmatprep.mubr.f32.mxu1 %v2059_v33 }
 0x196   : > { %1665 = vmatmul.mubr.msk.f32.gmra.mrb[42].mxu0 %vm431_vm0, %v403_v26  ;;  %1714 = vmatmul.mubr.msk.f32.gmra.mrb[42].mxu1 %vm431_vm0, %v403_v26 }
 0x197   : > { %775 = vmatprep.mubr.f32.mxu0 %v2059_v33  ;;  %1134 = vmatprep.mubr.f32.mxu1 %v2059_v33 }
 0x19a   : > { %1666 = vmatmul.mubr.msk.f32.gmra.mrb[44].mxu0 %vm431_vm0, %v404_v27  ;;  %1715 = vmatmul.mubr.msk.f32.gmra.mrb[44].mxu1 %vm431_vm0, %v404_v27 }
 0x19b   : > { %781 = vmatprep.mubr.f32.mxu0 %v2059_v33  ;;  %1140 = vmatprep.mubr.f32.mxu1 %v2059_v33 }
 0x19e   : > { %1667 = vmatmul.mubr.msk.f32.gmra.mrb[46].mxu0 %vm431_vm0, %v405_v28  ;;  %1716 = vmatmul.mubr.msk.f32.gmra.mrb[46].mxu1 %vm431_vm0, %v405_v28 }
 0x19f   : > { %787 = vmatprep.mubr.f32.mxu0 %v2059_v33  ;;  %1146 = vmatprep.mubr.f32.mxu1 %v2059_v33 }
 0x1a2   : > { %1668 = vmatmul.mubr.msk.f32.gmra.mrb[48].mxu0 %vm431_vm0, %v406_v29  ;;  %1717 = vmatmul.mubr.msk.f32.gmra.mrb[48].mxu1 %vm431_vm0, %v406_v29 }
 0x1a3   : > { %793 = vmatprep.mubr.f32.mxu0 %v2059_v33  ;;  %1152 = vmatprep.mubr.f32.mxu1 %v2059_v33 }
 0x1a6   : > { %1669 = vmatmul.mubr.msk.f32.gmra.mrb[50].mxu0 %vm431_vm0, %v407_v30  ;;  %1718 = vmatmul.mubr.msk.f32.gmra.mrb[50].mxu1 %vm431_vm0, %v407_v30 }
 0x1a7   : > { %799 = vmatprep.mubr.f32.mxu0 %v2059_v33  ;;  %1158 = vmatprep.mubr.f32.mxu1 %v2059_v33 }
 0x1aa   : > { %1670 = vmatmul.mubr.msk.f32.gmra.mrb[52].mxu0 %vm431_vm0, %v408_v31  ;;  %1719 = vmatmul.mubr.msk.f32.gmra.mrb[52].mxu1 %vm431_vm0, %v408_v31 }
 0x1ab   : > { %805 = vmatprep.mubr.f32.mxu0 %v2059_v33  ;;  %1164 = vmatprep.mubr.f32.mxu1 %v2059_v33 }
 0x1ae   : > { %1671 = vmatmul.mubr.msk.f32.gmra.mrb[54].mxu0 %vm431_vm0, %v409_v32  ;;  %1720 = vmatmul.mubr.msk.f32.gmra.mrb[54].mxu1 %vm431_vm0, %v409_v32 }
 0x1af   : > { %811 = vmatprep.mubr.f32.mxu0 %v2059_v33  ;;  %1170 = vmatprep.mubr.f32.mxu1 %v2059_v33 }
 0x1b2   : > { %1672 = vmatmul.mubr.msk.f32.gmra.mrb[56].mxu0 %vm431_vm0, %v410_v34  ;;  %1721 = vmatmul.mubr.msk.f32.gmra.mrb[56].mxu1 %vm431_vm0, %v410_v34 }
 0x1b3   : > { %817 = vmatprep.mubr.f32.mxu0 %v2059_v33  ;;  %1176 = vmatprep.mubr.f32.mxu1 %v2059_v33 }
 0x1b6   : > { %1673 = vmatmul.mubr.msk.f32.gmra.mrb[58].mxu0 %vm431_vm0, %v411_v35  ;;  %1722 = vmatmul.mubr.msk.f32.gmra.mrb[58].mxu1 %vm431_vm0, %v411_v35 }
 0x1b7   : > { %823 = vmatprep.mubr.f32.mxu0 %v2059_v33  ;;  %1182 = vmatprep.mubr.f32.mxu1 %v2059_v33 }
 0x1ba   : > { %1674 = vmatmul.mubr.msk.f32.gmra.mrb[60].mxu0 %vm431_vm0, %v412_v36  ;;  %1723 = vmatmul.mubr.msk.f32.gmra.mrb[60].mxu1 %vm431_vm0, %v412_v36 }
 0x1bb   : > { %829 = vmatprep.mubr.f32.mxu0 %v2059_v33  ;;  %1188 = vmatprep.mubr.f32.mxu1 %v2059_v33 }
 0x1be   : > { %1675 = vmatmul.mubr.msk.f32.gmra.mrb[62].mxu0 %vm431_vm0, %v413_v37  ;;  %1724 = vmatmul.mubr.msk.f32.gmra.mrb[62].mxu1 %vm431_vm0, %v413_v37 }
 0x1bf   : > { %835 = vmatprep.mubr.f32.mxu0 %v2059_v33  ;;  %1194 = vmatprep.mubr.f32.mxu1 %v2059_v33 }
 0x1c2   : > { %1676 = vmatmul.mubr.msk.f32.gmra.mrb[64].mxu0 %vm431_vm0, %v414_v38  ;;  %1725 = vmatmul.mubr.msk.f32.gmra.mrb[64].mxu1 %vm431_vm0, %v414_v38 }
 0x1c3   : > { %841 = vmatprep.mubr.f32.mxu0 %v2059_v33  ;;  %1200 = vmatprep.mubr.f32.mxu1 %v2059_v33 }
 0x1c6   : > { %1677 = vmatmul.mubr.msk.f32.gmra.mrb[66].mxu0 %vm431_vm0, %v415_v39  ;;  %1726 = vmatmul.mubr.msk.f32.gmra.mrb[66].mxu1 %vm431_vm0, %v415_v39 }
 0x1c7   : > { %847 = vmatprep.mubr.f32.mxu0 %v2059_v33  ;;  %1206 = vmatprep.mubr.f32.mxu1 %v2059_v33 }
 0x1ca   : > { %1678 = vmatmul.mubr.msk.f32.gmra.mrb[68].mxu0 %vm431_vm0, %v416_v40  ;;  %1727 = vmatmul.mubr.msk.f32.gmra.mrb[68].mxu1 %vm431_vm0, %v416_v40 }
 0x1cb   : > { %853 = vmatprep.mubr.f32.mxu0 %v2059_v33  ;;  %1212 = vmatprep.mubr.f32.mxu1 %v2059_v33 }
 0x1ce   : > { %1679 = vmatmul.mubr.msk.f32.gmra.mrb[70].mxu0 %vm431_vm0, %v417_v41  ;;  %1728 = vmatmul.mubr.msk.f32.gmra.mrb[70].mxu1 %vm431_vm0, %v417_v41 }
 0x1cf   : > { %859 = vmatprep.mubr.f32.mxu0 %v2059_v33  ;;  %1218 = vmatprep.mubr.f32.mxu1 %v2059_v33 }
 0x1d2   : > { %1680 = vmatmul.mubr.msk.f32.gmra.mrb[72].mxu0 %vm431_vm0, %v418_v42  ;;  %1729 = vmatmul.mubr.msk.f32.gmra.mrb[72].mxu1 %vm431_vm0, %v418_v42 }
 0x1d3   : > { %865 = vmatprep.mubr.f32.mxu0 %v2059_v33  ;;  %1224 = vmatprep.mubr.f32.mxu1 %v2059_v33 }
 0x1d6   : > { %1681 = vmatmul.mubr.msk.f32.gmra.mrb[74].mxu0 %vm431_vm0, %v419_v43  ;;  %1730 = vmatmul.mubr.msk.f32.gmra.mrb[74].mxu1 %vm431_vm0, %v419_v43 }
 0x1d7   : > { %871 = vmatprep.mubr.f32.mxu0 %v2059_v33  ;;  %1230 = vmatprep.mubr.f32.mxu1 %v2059_v33 }
 0x1da   : > { %1682 = vmatmul.mubr.msk.f32.gmra.mrb[76].mxu0 %vm431_vm0, %v420_v44  ;;  %1731 = vmatmul.mubr.msk.f32.gmra.mrb[76].mxu1 %vm431_vm0, %v420_v44 }
 0x1db   : > { %877 = vmatprep.mubr.f32.mxu0 %v2059_v33  ;;  %1236 = vmatprep.mubr.f32.mxu1 %v2059_v33 }
 0x1de   : > { %1683 = vmatmul.mubr.msk.f32.gmra.mrb[78].mxu0 %vm431_vm0, %v421_v45  ;;  %1732 = vmatmul.mubr.msk.f32.gmra.mrb[78].mxu1 %vm431_vm0, %v421_v45 }
 0x1df   : > { %883 = vmatprep.mubr.f32.mxu0 %v2059_v33  ;;  %1242 = vmatprep.mubr.f32.mxu1 %v2059_v33 }
 0x1e2   : > { %1684 = vmatmul.mubr.msk.f32.gmra.mrb[80].mxu0 %vm431_vm0, %v422_v46  ;;  %1733 = vmatmul.mubr.msk.f32.gmra.mrb[80].mxu1 %vm431_vm0, %v422_v46 }
 0x1e3   : > { %889 = vmatprep.mubr.f32.mxu0 %v2059_v33  ;;  %1248 = vmatprep.mubr.f32.mxu1 %v2059_v33 }
 0x1e6   : > { %1685 = vmatmul.mubr.msk.f32.gmra.mrb[82].mxu0 %vm431_vm0, %v423_v47  ;;  %1734 = vmatmul.mubr.msk.f32.gmra.mrb[82].mxu1 %vm431_vm0, %v423_v47 }
 0x1e7   : > { %895 = vmatprep.mubr.f32.mxu0 %v2059_v33  ;;  %1254 = vmatprep.mubr.f32.mxu1 %v2059_v33 }
 0x1ea   : > { %1686 = vmatmul.mubr.msk.f32.gmra.mrb[84].mxu0 %vm431_vm0, %v424_v48  ;;  %1735 = vmatmul.mubr.msk.f32.gmra.mrb[84].mxu1 %vm431_vm0, %v424_v48 }
 0x1eb   : > { %901 = vmatprep.mubr.f32.mxu0 %v2059_v33  ;;  %1260 = vmatprep.mubr.f32.mxu1 %v2059_v33 }
 0x1ee   : > { %1687 = vmatmul.mubr.msk.f32.gmra.mrb[86].mxu0 %vm431_vm0, %v425_v49  ;;  %1736 = vmatmul.mubr.msk.f32.gmra.mrb[86].mxu1 %vm431_vm0, %v425_v49 }
 0x1ef   : > { %907 = vmatprep.mubr.f32.mxu0 %v2059_v33  ;;  %1266 = vmatprep.mubr.f32.mxu1 %v2059_v33 }
 0x1f2   : > { %1688 = vmatmul.mubr.msk.f32.gmra.mrb[88].mxu0 %vm431_vm0, %v426_v50  ;;  %1737 = vmatmul.mubr.msk.f32.gmra.mrb[88].mxu1 %vm431_vm0, %v426_v50 }
 0x1f3   : > { %913 = vmatprep.mubr.f32.mxu0 %v2059_v33  ;;  %1272 = vmatprep.mubr.f32.mxu1 %v2059_v33 }
 0x1f6   : > { %1689 = vmatmul.mubr.msk.f32.gmra.mrb[90].mxu0 %vm431_vm0, %v427_v51  ;;  %1738 = vmatmul.mubr.msk.f32.gmra.mrb[90].mxu1 %vm431_vm0, %v427_v51 }
 0x1f7   : > { %919 = vmatprep.mubr.f32.mxu0 %v2059_v33  ;;  %1278 = vmatprep.mubr.f32.mxu1 %v2059_v33 }
 0x1fa   : > { %1690 = vmatmul.mubr.msk.f32.gmra.mrb[92].mxu0 %vm431_vm0, %v428_v52  ;;  %1739 = vmatmul.mubr.msk.f32.gmra.mrb[92].mxu1 %vm431_vm0, %v428_v52 }
 0x1fb   : > { %925 = vmatprep.mubr.f32.mxu0 %v2059_v33  ;;  %1284 = vmatprep.mubr.f32.mxu1 %v2059_v33 }
 0x1fe   : > { %1691 = vmatmul.mubr.msk.f32.gmra.mrb[94].mxu0 %vm431_vm0, %v429_v53  ;;  %1740 = vmatmul.mubr.msk.f32.gmra.mrb[94].mxu1 %vm431_vm0, %v429_v53 }
 0x1ff   : > { %931 = vmatprep.mubr.f32.mxu0 %v2059_v33  ;;  %1290 = vmatprep.mubr.f32.mxu1 %v2059_v33 }
 0x202   : > { %1692 = vmatmul.mubr.msk.f32.gmra.mrb[96].mxu0 %vm431_vm0, %v430_v54  ;;  %1741 = vmatmul.mubr.msk.f32.gmra.mrb[96].mxu1 %vm431_vm0, %v430_v54 }
 0x215   : > { %v645_v55 = vpop.f32.mrb[0].mxu0  ;;  %v1004_v56 = vpop.f32.mrb[0].mxu1 }
 0x216   : > { %1297 = vst [vmem:[%s2642_s28] sm:$0xff] %v645_v55  ;;  %1299 = vst [vmem:[%s2642_s28 + $0x10] sm:$0xff] %v1004_v56  ;;  %v647_v33 = vpop.f32.mrb[1].mxu0  ;;  %v1006_v57 = vpop.f32.mrb[1].mxu1 }
 0x217   : > { %1298 = vst [vmem:[%s2642_s28 + $0x8] sm:$0xff] %v647_v33  ;;  %1301 = vst.msk [vmem:[%s2642_s28 + $0x18] sm:$0xff] %vm1300_vm1, %v1006_v57 }
 0x219   : > { %v651_v58 = vpop.f32.mrb[2].mxu0  ;;  %v1010_v59 = vpop.f32.mrb[2].mxu1 }
 0x21a   : > { %1302 = vst [vmem:[%s2642_s28 + $0x20] sm:$0xff] %v651_v58  ;;  %1304 = vst [vmem:[%s2642_s28 + $0x30] sm:$0xff] %v1010_v59  ;;  %v653_v60 = vpop.f32.mrb[3].mxu0  ;;  %v1012_v61 = vpop.f32.mrb[3].mxu1 }
 0x21b   : > { %1303 = vst [vmem:[%s2642_s28 + $0x28] sm:$0xff] %v653_v60  ;;  %1305 = vst.msk [vmem:[%s2642_s28 + $0x38] sm:$0xff] %vm1300_vm1, %v1012_v61 }
 0x21d   : > { %v657_v62 = vpop.f32.mrb[4].mxu0  ;;  %v1016_v63 = vpop.f32.mrb[4].mxu1 }
 0x21e   : > { %1306 = vst [vmem:[%s2642_s28 + $0x40] sm:$0xff] %v657_v62  ;;  %1308 = vst [vmem:[%s2642_s28 + $0x50] sm:$0xff] %v1016_v63  ;;  %v659_v0 = vpop.f32.mrb[5].mxu0  ;;  %v1018_v1 = vpop.f32.mrb[5].mxu1 }
 0x21f   : > { %1307 = vst [vmem:[%s2642_s28 + $0x48] sm:$0xff] %v659_v0  ;;  %1309 = vst.msk [vmem:[%s2642_s28 + $0x58] sm:$0xff] %vm1300_vm1, %v1018_v1 }
 0x221   : > { %v663_v2 = vpop.f32.mrb[6].mxu0  ;;  %v1022_v3 = vpop.f32.mrb[6].mxu1 }
 0x222   : > { %1310 = vst [vmem:[%s2642_s28 + $0x60] sm:$0xff] %v663_v2  ;;  %1312 = vst [vmem:[%s2642_s28 + $0x70] sm:$0xff] %v1022_v3  ;;  %v665_v4 = vpop.f32.mrb[7].mxu0  ;;  %v1024_v5 = vpop.f32.mrb[7].mxu1 }
 0x223   : > { %1311 = vst [vmem:[%s2642_s28 + $0x68] sm:$0xff] %v665_v4  ;;  %1313 = vst.msk [vmem:[%s2642_s28 + $0x78] sm:$0xff] %vm1300_vm1, %v1024_v5 }
 0x225   : > { %v669_v6 = vpop.f32.mrb[8].mxu0  ;;  %v1028_v7 = vpop.f32.mrb[8].mxu1 }
 0x226   : > { %1314 = vst [vmem:[%s2642_s28 + $0x80] sm:$0xff] %v669_v6  ;;  %1316 = vst [vmem:[%s2642_s28 + $0x90] sm:$0xff] %v1028_v7  ;;  %v671_v8 = vpop.f32.mrb[9].mxu0  ;;  %v1030_v9 = vpop.f32.mrb[9].mxu1 }
 0x227   : > { %1315 = vst [vmem:[%s2642_s28 + $0x88] sm:$0xff] %v671_v8  ;;  %1317 = vst.msk [vmem:[%s2642_s28 + $0x98] sm:$0xff] %vm1300_vm1, %v1030_v9 }
 0x229   : > { %v675_v10 = vpop.f32.mrb[10].mxu0  ;;  %v1034_v11 = vpop.f32.mrb[10].mxu1 }
 0x22a   : > { %1318 = vst [vmem:[%s2642_s28 + $0xa0] sm:$0xff] %v675_v10  ;;  %1320 = vst [vmem:[%s2642_s28 + $0xb0] sm:$0xff] %v1034_v11  ;;  %v677_v12 = vpop.f32.mrb[11].mxu0  ;;  %v1036_v13 = vpop.f32.mrb[11].mxu1 }
 0x22b   : > { %1319 = vst [vmem:[%s2642_s28 + $0xa8] sm:$0xff] %v677_v12  ;;  %1321 = vst.msk [vmem:[%s2642_s28 + $0xb8] sm:$0xff] %vm1300_vm1, %v1036_v13 }
 0x22d   : > { %v681_v14 = vpop.f32.mrb[12].mxu0  ;;  %v1040_v15 = vpop.f32.mrb[12].mxu1 }
 0x22e   : > { %1322 = vst [vmem:[%s2642_s28 + $0xc0] sm:$0xff] %v681_v14  ;;  %1324 = vst [vmem:[%s2642_s28 + $0xd0] sm:$0xff] %v1040_v15  ;;  %v683_v16 = vpop.f32.mrb[13].mxu0  ;;  %v1042_v17 = vpop.f32.mrb[13].mxu1 }
 0x22f   : > { %1323 = vst [vmem:[%s2642_s28 + $0xc8] sm:$0xff] %v683_v16  ;;  %1325 = vst.msk [vmem:[%s2642_s28 + $0xd8] sm:$0xff] %vm1300_vm1, %v1042_v17 }
 0x231   : > { %v687_v18 = vpop.f32.mrb[14].mxu0  ;;  %v1046_v19 = vpop.f32.mrb[14].mxu1 }
 0x232   : > { %1326 = vst [vmem:[%s2642_s28 + $0xe0] sm:$0xff] %v687_v18  ;;  %1328 = vst [vmem:[%s2642_s28 + $0xf0] sm:$0xff] %v1046_v19  ;;  %v689_v20 = vpop.f32.mrb[15].mxu0  ;;  %v1048_v21 = vpop.f32.mrb[15].mxu1 }
 0x233   : > { %1327 = vst [vmem:[%s2642_s28 + $0xe8] sm:$0xff] %v689_v20  ;;  %1329 = vst.msk [vmem:[%s2642_s28 + $0xf8] sm:$0xff] %vm1300_vm1, %v1048_v21 }
 0x235   : > { %v693_v22 = vpop.f32.mrb[16].mxu0  ;;  %v1052_v23 = vpop.f32.mrb[16].mxu1 }
 0x236   : > { %1330 = vst [vmem:[%s2642_s28 + $0x100] sm:$0xff] %v693_v22  ;;  %1332 = vst [vmem:[%s2642_s28 + $0x110] sm:$0xff] %v1052_v23  ;;  %v695_v24 = vpop.f32.mrb[17].mxu0  ;;  %v1054_v25 = vpop.f32.mrb[17].mxu1 }
 0x237   : > { %1331 = vst [vmem:[%s2642_s28 + $0x108] sm:$0xff] %v695_v24  ;;  %1333 = vst.msk [vmem:[%s2642_s28 + $0x118] sm:$0xff] %vm1300_vm1, %v1054_v25 }
 0x239   : > { %v699_v26 = vpop.f32.mrb[18].mxu0  ;;  %v1058_v27 = vpop.f32.mrb[18].mxu1 }
 0x23a   : > { %1334 = vst [vmem:[%s2642_s28 + $0x120] sm:$0xff] %v699_v26  ;;  %1336 = vst [vmem:[%s2642_s28 + $0x130] sm:$0xff] %v1058_v27  ;;  %v701_v28 = vpop.f32.mrb[19].mxu0  ;;  %v1060_v29 = vpop.f32.mrb[19].mxu1 }
 0x23b   : > { %1335 = vst [vmem:[%s2642_s28 + $0x128] sm:$0xff] %v701_v28  ;;  %1337 = vst.msk [vmem:[%s2642_s28 + $0x138] sm:$0xff] %vm1300_vm1, %v1060_v29 }
 0x23d   : > { %v705_v30 = vpop.f32.mrb[20].mxu0  ;;  %v1064_v31 = vpop.f32.mrb[20].mxu1 }
 0x23e   : > { %1338 = vst [vmem:[%s2642_s28 + $0x140] sm:$0xff] %v705_v30  ;;  %1340 = vst [vmem:[%s2642_s28 + $0x150] sm:$0xff] %v1064_v31  ;;  %v707_v32 = vpop.f32.mrb[21].mxu0  ;;  %v1066_v34 = vpop.f32.mrb[21].mxu1 }
 0x23f   : > { %1339 = vst [vmem:[%s2642_s28 + $0x148] sm:$0xff] %v707_v32  ;;  %1341 = vst.msk [vmem:[%s2642_s28 + $0x158] sm:$0xff] %vm1300_vm1, %v1066_v34 }
 0x241   : > { %v711_v35 = vpop.f32.mrb[22].mxu0  ;;  %v1070_v36 = vpop.f32.mrb[22].mxu1 }
 0x242   : > { %1342 = vst [vmem:[%s2642_s28 + $0x160] sm:$0xff] %v711_v35  ;;  %1344 = vst [vmem:[%s2642_s28 + $0x170] sm:$0xff] %v1070_v36  ;;  %v713_v37 = vpop.f32.mrb[23].mxu0  ;;  %v1072_v38 = vpop.f32.mrb[23].mxu1 }
 0x243   : > { %1343 = vst [vmem:[%s2642_s28 + $0x168] sm:$0xff] %v713_v37  ;;  %1345 = vst.msk [vmem:[%s2642_s28 + $0x178] sm:$0xff] %vm1300_vm1, %v1072_v38 }
 0x245   : > { %v717_v39 = vpop.f32.mrb[24].mxu0  ;;  %v1076_v40 = vpop.f32.mrb[24].mxu1 }
 0x246   : > { %1346 = vst [vmem:[%s2642_s28 + $0x180] sm:$0xff] %v717_v39  ;;  %1348 = vst [vmem:[%s2642_s28 + $0x190] sm:$0xff] %v1076_v40  ;;  %v719_v41 = vpop.f32.mrb[25].mxu0  ;;  %v1078_v42 = vpop.f32.mrb[25].mxu1 }
 0x247   : > { %1347 = vst [vmem:[%s2642_s28 + $0x188] sm:$0xff] %v719_v41  ;;  %1349 = vst.msk [vmem:[%s2642_s28 + $0x198] sm:$0xff] %vm1300_vm1, %v1078_v42 }
 0x249   : > { %v723_v43 = vpop.f32.mrb[26].mxu0  ;;  %v1082_v44 = vpop.f32.mrb[26].mxu1 }
 0x24a   : > { %1350 = vst [vmem:[%s2642_s28 + $0x1a0] sm:$0xff] %v723_v43  ;;  %1352 = vst [vmem:[%s2642_s28 + $0x1b0] sm:$0xff] %v1082_v44  ;;  %v725_v45 = vpop.f32.mrb[27].mxu0  ;;  %v1084_v46 = vpop.f32.mrb[27].mxu1 }
 0x24b   : > { %1351 = vst [vmem:[%s2642_s28 + $0x1a8] sm:$0xff] %v725_v45  ;;  %1353 = vst.msk [vmem:[%s2642_s28 + $0x1b8] sm:$0xff] %vm1300_vm1, %v1084_v46 }
 0x24d   : > { %v729_v47 = vpop.f32.mrb[28].mxu0  ;;  %v1088_v48 = vpop.f32.mrb[28].mxu1 }
 0x24e   : > { %1354 = vst [vmem:[%s2642_s28 + $0x1c0] sm:$0xff] %v729_v47  ;;  %1356 = vst [vmem:[%s2642_s28 + $0x1d0] sm:$0xff] %v1088_v48  ;;  %v731_v49 = vpop.f32.mrb[29].mxu0  ;;  %v1090_v50 = vpop.f32.mrb[29].mxu1 }
 0x24f   : > { %1355 = vst [vmem:[%s2642_s28 + $0x1c8] sm:$0xff] %v731_v49  ;;  %1357 = vst.msk [vmem:[%s2642_s28 + $0x1d8] sm:$0xff] %vm1300_vm1, %v1090_v50 }
 0x251   : > { %v735_v51 = vpop.f32.mrb[30].mxu0  ;;  %v1094_v52 = vpop.f32.mrb[30].mxu1 }
 0x252   : > { %1358 = vst [vmem:[%s2642_s28 + $0x1e0] sm:$0xff] %v735_v51  ;;  %1360 = vst [vmem:[%s2642_s28 + $0x1f0] sm:$0xff] %v1094_v52  ;;  %v737_v53 = vpop.f32.mrb[31].mxu0  ;;  %v1096_v54 = vpop.f32.mrb[31].mxu1 }
 0x253   : > { %1359 = vst [vmem:[%s2642_s28 + $0x1e8] sm:$0xff] %v737_v53  ;;  %1361 = vst.msk [vmem:[%s2642_s28 + $0x1f8] sm:$0xff] %vm1300_vm1, %v1096_v54 }
 0x255   : > { %v741_v55 = vpop.f32.mrb[32].mxu0  ;;  %v1100_v56 = vpop.f32.mrb[32].mxu1 }
 0x256   : > { %1362 = vst [vmem:[%s2642_s28 + $0x200] sm:$0xff] %v741_v55  ;;  %1364 = vst [vmem:[%s2642_s28 + $0x210] sm:$0xff] %v1100_v56  ;;  %v743_v33 = vpop.f32.mrb[33].mxu0  ;;  %v1102_v57 = vpop.f32.mrb[33].mxu1 }
 0x257   : > { %1363 = vst [vmem:[%s2642_s28 + $0x208] sm:$0xff] %v743_v33  ;;  %1365 = vst.msk [vmem:[%s2642_s28 + $0x218] sm:$0xff] %vm1300_vm1, %v1102_v57 }
 0x259   : > { %v747_v58 = vpop.f32.mrb[34].mxu0  ;;  %v1106_v59 = vpop.f32.mrb[34].mxu1 }
 0x25a   : > { %1366 = vst [vmem:[%s2642_s28 + $0x220] sm:$0xff] %v747_v58  ;;  %1368 = vst [vmem:[%s2642_s28 + $0x230] sm:$0xff] %v1106_v59  ;;  %v749_v60 = vpop.f32.mrb[35].mxu0  ;;  %v1108_v61 = vpop.f32.mrb[35].mxu1 }
 0x25b   : > { %1367 = vst [vmem:[%s2642_s28 + $0x228] sm:$0xff] %v749_v60  ;;  %1369 = vst.msk [vmem:[%s2642_s28 + $0x238] sm:$0xff] %vm1300_vm1, %v1108_v61 }
 0x25d   : > { %v753_v62 = vpop.f32.mrb[36].mxu0  ;;  %v1112_v63 = vpop.f32.mrb[36].mxu1 }
 0x25e   : > { %1370 = vst [vmem:[%s2642_s28 + $0x240] sm:$0xff] %v753_v62  ;;  %1372 = vst [vmem:[%s2642_s28 + $0x250] sm:$0xff] %v1112_v63  ;;  %v755_v0 = vpop.f32.mrb[37].mxu0  ;;  %v1114_v1 = vpop.f32.mrb[37].mxu1 }
 0x25f   : > { %1371 = vst [vmem:[%s2642_s28 + $0x248] sm:$0xff] %v755_v0  ;;  %1373 = vst.msk [vmem:[%s2642_s28 + $0x258] sm:$0xff] %vm1300_vm1, %v1114_v1 }
 0x261   : > { %v759_v2 = vpop.f32.mrb[38].mxu0  ;;  %v1118_v3 = vpop.f32.mrb[38].mxu1 }
 0x262   : > { %1374 = vst [vmem:[%s2642_s28 + $0x260] sm:$0xff] %v759_v2  ;;  %1376 = vst [vmem:[%s2642_s28 + $0x270] sm:$0xff] %v1118_v3  ;;  %v761_v4 = vpop.f32.mrb[39].mxu0  ;;  %v1120_v5 = vpop.f32.mrb[39].mxu1 }
 0x263   : > { %1375 = vst [vmem:[%s2642_s28 + $0x268] sm:$0xff] %v761_v4  ;;  %1377 = vst.msk [vmem:[%s2642_s28 + $0x278] sm:$0xff] %vm1300_vm1, %v1120_v5 }
 0x265   : > { %v765_v6 = vpop.f32.mrb[40].mxu0  ;;  %v1124_v7 = vpop.f32.mrb[40].mxu1 }
 0x266   : > { %1378 = vst [vmem:[%s2642_s28 + $0x280] sm:$0xff] %v765_v6  ;;  %1380 = vst [vmem:[%s2642_s28 + $0x290] sm:$0xff] %v1124_v7  ;;  %v767_v8 = vpop.f32.mrb[41].mxu0  ;;  %v1126_v9 = vpop.f32.mrb[41].mxu1 }
 0x267   : > { %1379 = vst [vmem:[%s2642_s28 + $0x288] sm:$0xff] %v767_v8  ;;  %1381 = vst.msk [vmem:[%s2642_s28 + $0x298] sm:$0xff] %vm1300_vm1, %v1126_v9 }
 0x269   : > { %v771_v10 = vpop.f32.mrb[42].mxu0  ;;  %v1130_v11 = vpop.f32.mrb[42].mxu1 }
 0x26a   : > { %1382 = vst [vmem:[%s2642_s28 + $0x2a0] sm:$0xff] %v771_v10  ;;  %1384 = vst [vmem:[%s2642_s28 + $0x2b0] sm:$0xff] %v1130_v11  ;;  %v773_v12 = vpop.f32.mrb[43].mxu0  ;;  %v1132_v13 = vpop.f32.mrb[43].mxu1 }
 0x26b   : > { %1383 = vst [vmem:[%s2642_s28 + $0x2a8] sm:$0xff] %v773_v12  ;;  %1385 = vst.msk [vmem:[%s2642_s28 + $0x2b8] sm:$0xff] %vm1300_vm1, %v1132_v13 }
 0x26d   : > { %v777_v14 = vpop.f32.mrb[44].mxu0  ;;  %v1136_v15 = vpop.f32.mrb[44].mxu1 }
 0x26e   : > { %1386 = vst [vmem:[%s2642_s28 + $0x2c0] sm:$0xff] %v777_v14  ;;  %1388 = vst [vmem:[%s2642_s28 + $0x2d0] sm:$0xff] %v1136_v15  ;;  %v779_v16 = vpop.f32.mrb[45].mxu0  ;;  %v1138_v17 = vpop.f32.mrb[45].mxu1 }
 0x26f   : > { %1387 = vst [vmem:[%s2642_s28 + $0x2c8] sm:$0xff] %v779_v16  ;;  %1389 = vst.msk [vmem:[%s2642_s28 + $0x2d8] sm:$0xff] %vm1300_vm1, %v1138_v17 }
 0x271   : > { %v783_v18 = vpop.f32.mrb[46].mxu0  ;;  %v1142_v19 = vpop.f32.mrb[46].mxu1 }
 0x272   : > { %1390 = vst [vmem:[%s2642_s28 + $0x2e0] sm:$0xff] %v783_v18  ;;  %1392 = vst [vmem:[%s2642_s28 + $0x2f0] sm:$0xff] %v1142_v19  ;;  %v785_v20 = vpop.f32.mrb[47].mxu0  ;;  %v1144_v21 = vpop.f32.mrb[47].mxu1 }
 0x273   : > { %1391 = vst [vmem:[%s2642_s28 + $0x2e8] sm:$0xff] %v785_v20  ;;  %1393 = vst.msk [vmem:[%s2642_s28 + $0x2f8] sm:$0xff] %vm1300_vm1, %v1144_v21 }
 0x275   : > { %v789_v22 = vpop.f32.mrb[48].mxu0  ;;  %v1148_v23 = vpop.f32.mrb[48].mxu1 }
 0x276   : > { %1394 = vst [vmem:[%s2642_s28 + $0x300] sm:$0xff] %v789_v22  ;;  %1396 = vst [vmem:[%s2642_s28 + $0x310] sm:$0xff] %v1148_v23  ;;  %v791_v24 = vpop.f32.mrb[49].mxu0  ;;  %v1150_v25 = vpop.f32.mrb[49].mxu1 }
 0x277   : > { %1395 = vst [vmem:[%s2642_s28 + $0x308] sm:$0xff] %v791_v24  ;;  %1397 = vst.msk [vmem:[%s2642_s28 + $0x318] sm:$0xff] %vm1300_vm1, %v1150_v25 }
 0x279   : > { %v795_v26 = vpop.f32.mrb[50].mxu0  ;;  %v1154_v27 = vpop.f32.mrb[50].mxu1 }
 0x27a   : > { %1398 = vst [vmem:[%s2642_s28 + $0x320] sm:$0xff] %v795_v26  ;;  %1400 = vst [vmem:[%s2642_s28 + $0x330] sm:$0xff] %v1154_v27  ;;  %v797_v28 = vpop.f32.mrb[51].mxu0  ;;  %v1156_v29 = vpop.f32.mrb[51].mxu1 }
 0x27b   : > { %1399 = vst [vmem:[%s2642_s28 + $0x328] sm:$0xff] %v797_v28  ;;  %1401 = vst.msk [vmem:[%s2642_s28 + $0x338] sm:$0xff] %vm1300_vm1, %v1156_v29 }
 0x27d   : > { %v801_v30 = vpop.f32.mrb[52].mxu0  ;;  %v1160_v31 = vpop.f32.mrb[52].mxu1 }
 0x27e   : > { %1402 = vst [vmem:[%s2642_s28 + $0x340] sm:$0xff] %v801_v30  ;;  %1404 = vst [vmem:[%s2642_s28 + $0x350] sm:$0xff] %v1160_v31  ;;  %v803_v32 = vpop.f32.mrb[53].mxu0  ;;  %v1162_v34 = vpop.f32.mrb[53].mxu1 }
 0x27f   : > { %1403 = vst [vmem:[%s2642_s28 + $0x348] sm:$0xff] %v803_v32  ;;  %1405 = vst.msk [vmem:[%s2642_s28 + $0x358] sm:$0xff] %vm1300_vm1, %v1162_v34 }
 0x281   : > { %v807_v35 = vpop.f32.mrb[54].mxu0  ;;  %v1166_v36 = vpop.f32.mrb[54].mxu1 }
 0x282   : > { %1406 = vst [vmem:[%s2642_s28 + $0x360] sm:$0xff] %v807_v35  ;;  %1408 = vst [vmem:[%s2642_s28 + $0x370] sm:$0xff] %v1166_v36  ;;  %v809_v37 = vpop.f32.mrb[55].mxu0  ;;  %v1168_v38 = vpop.f32.mrb[55].mxu1 }
 0x283   : > { %1407 = vst [vmem:[%s2642_s28 + $0x368] sm:$0xff] %v809_v37  ;;  %1409 = vst.msk [vmem:[%s2642_s28 + $0x378] sm:$0xff] %vm1300_vm1, %v1168_v38 }
 0x285   : > { %v813_v39 = vpop.f32.mrb[56].mxu0  ;;  %v1172_v40 = vpop.f32.mrb[56].mxu1 }
 0x286   : > { %1410 = vst [vmem:[%s2642_s28 + $0x380] sm:$0xff] %v813_v39  ;;  %1412 = vst [vmem:[%s2642_s28 + $0x390] sm:$0xff] %v1172_v40  ;;  %v815_v41 = vpop.f32.mrb[57].mxu0  ;;  %v1174_v42 = vpop.f32.mrb[57].mxu1 }
 0x287   : > { %1411 = vst [vmem:[%s2642_s28 + $0x388] sm:$0xff] %v815_v41  ;;  %1413 = vst.msk [vmem:[%s2642_s28 + $0x398] sm:$0xff] %vm1300_vm1, %v1174_v42 }
 0x289   : > { %v819_v43 = vpop.f32.mrb[58].mxu0  ;;  %v1178_v44 = vpop.f32.mrb[58].mxu1 }
 0x28a   : > { %1414 = vst [vmem:[%s2642_s28 + $0x3a0] sm:$0xff] %v819_v43  ;;  %1416 = vst [vmem:[%s2642_s28 + $0x3b0] sm:$0xff] %v1178_v44  ;;  %v821_v45 = vpop.f32.mrb[59].mxu0  ;;  %v1180_v46 = vpop.f32.mrb[59].mxu1 }
 0x28b   : > { %1415 = vst [vmem:[%s2642_s28 + $0x3a8] sm:$0xff] %v821_v45  ;;  %1417 = vst.msk [vmem:[%s2642_s28 + $0x3b8] sm:$0xff] %vm1300_vm1, %v1180_v46 }
 0x28d   : > { %v825_v47 = vpop.f32.mrb[60].mxu0  ;;  %v1184_v48 = vpop.f32.mrb[60].mxu1 }
 0x28e   : > { %1418 = vst [vmem:[%s2642_s28 + $0x3c0] sm:$0xff] %v825_v47  ;;  %1420 = vst [vmem:[%s2642_s28 + $0x3d0] sm:$0xff] %v1184_v48  ;;  %v827_v49 = vpop.f32.mrb[61].mxu0  ;;  %v1186_v50 = vpop.f32.mrb[61].mxu1 }
 0x28f   : > { %1419 = vst [vmem:[%s2642_s28 + $0x3c8] sm:$0xff] %v827_v49  ;;  %1421 = vst.msk [vmem:[%s2642_s28 + $0x3d8] sm:$0xff] %vm1300_vm1, %v1186_v50 }
 0x291   : > { %v831_v51 = vpop.f32.mrb[62].mxu0  ;;  %v1190_v52 = vpop.f32.mrb[62].mxu1 }
 0x292   : > { %1422 = vst [vmem:[%s2642_s28 + $0x3e0] sm:$0xff] %v831_v51  ;;  %1424 = vst [vmem:[%s2642_s28 + $0x3f0] sm:$0xff] %v1190_v52  ;;  %v833_v53 = vpop.f32.mrb[63].mxu0  ;;  %v1192_v54 = vpop.f32.mrb[63].mxu1 }
 0x293   : > { %1423 = vst [vmem:[%s2642_s28 + $0x3e8] sm:$0xff] %v833_v53  ;;  %1425 = vst.msk [vmem:[%s2642_s28 + $0x3f8] sm:$0xff] %vm1300_vm1, %v1192_v54 }
 0x295   : > { %v837_v55 = vpop.f32.mrb[64].mxu0  ;;  %v1196_v56 = vpop.f32.mrb[64].mxu1 }
 0x296   : > { %1426 = vst [vmem:[%s2642_s28 + $0x400] sm:$0xff] %v837_v55  ;;  %1428 = vst [vmem:[%s2642_s28 + $0x410] sm:$0xff] %v1196_v56  ;;  %v839_v33 = vpop.f32.mrb[65].mxu0  ;;  %v1198_v57 = vpop.f32.mrb[65].mxu1 }
 0x297   : > { %1427 = vst [vmem:[%s2642_s28 + $0x408] sm:$0xff] %v839_v33  ;;  %1429 = vst.msk [vmem:[%s2642_s28 + $0x418] sm:$0xff] %vm1300_vm1, %v1198_v57 }
 0x299   : > { %v843_v58 = vpop.f32.mrb[66].mxu0  ;;  %v1202_v59 = vpop.f32.mrb[66].mxu1 }
 0x29a   : > { %1430 = vst [vmem:[%s2642_s28 + $0x420] sm:$0xff] %v843_v58  ;;  %1432 = vst [vmem:[%s2642_s28 + $0x430] sm:$0xff] %v1202_v59  ;;  %v845_v60 = vpop.f32.mrb[67].mxu0  ;;  %v1204_v61 = vpop.f32.mrb[67].mxu1 }
 0x29b   : > { %1431 = vst [vmem:[%s2642_s28 + $0x428] sm:$0xff] %v845_v60  ;;  %1433 = vst.msk [vmem:[%s2642_s28 + $0x438] sm:$0xff] %vm1300_vm1, %v1204_v61 }
 0x29d   : > { %v849_v62 = vpop.f32.mrb[68].mxu0  ;;  %v1208_v63 = vpop.f32.mrb[68].mxu1 }
 0x29e   : > { %1434 = vst [vmem:[%s2642_s28 + $0x440] sm:$0xff] %v849_v62  ;;  %1436 = vst [vmem:[%s2642_s28 + $0x450] sm:$0xff] %v1208_v63  ;;  %v851_v0 = vpop.f32.mrb[69].mxu0  ;;  %v1210_v1 = vpop.f32.mrb[69].mxu1 }
 0x29f   : > { %1435 = vst [vmem:[%s2642_s28 + $0x448] sm:$0xff] %v851_v0  ;;  %1437 = vst.msk [vmem:[%s2642_s28 + $0x458] sm:$0xff] %vm1300_vm1, %v1210_v1 }
 0x2a1   : > { %v855_v2 = vpop.f32.mrb[70].mxu0  ;;  %v1214_v3 = vpop.f32.mrb[70].mxu1 }
 0x2a2   : > { %1438 = vst [vmem:[%s2642_s28 + $0x460] sm:$0xff] %v855_v2  ;;  %1440 = vst [vmem:[%s2642_s28 + $0x470] sm:$0xff] %v1214_v3  ;;  %v857_v4 = vpop.f32.mrb[71].mxu0  ;;  %v1216_v5 = vpop.f32.mrb[71].mxu1 }
 0x2a3   : > { %1439 = vst [vmem:[%s2642_s28 + $0x468] sm:$0xff] %v857_v4  ;;  %1441 = vst.msk [vmem:[%s2642_s28 + $0x478] sm:$0xff] %vm1300_vm1, %v1216_v5 }
 0x2a5   : > { %v861_v6 = vpop.f32.mrb[72].mxu0  ;;  %v1220_v7 = vpop.f32.mrb[72].mxu1 }
 0x2a6   : > { %1442 = vst [vmem:[%s2642_s28 + $0x480] sm:$0xff] %v861_v6  ;;  %1444 = vst [vmem:[%s2642_s28 + $0x490] sm:$0xff] %v1220_v7  ;;  %v863_v8 = vpop.f32.mrb[73].mxu0  ;;  %v1222_v9 = vpop.f32.mrb[73].mxu1 }
 0x2a7   : > { %1443 = vst [vmem:[%s2642_s28 + $0x488] sm:$0xff] %v863_v8  ;;  %1445 = vst.msk [vmem:[%s2642_s28 + $0x498] sm:$0xff] %vm1300_vm1, %v1222_v9 }
 0x2a9   : > { %v867_v10 = vpop.f32.mrb[74].mxu0  ;;  %v1226_v11 = vpop.f32.mrb[74].mxu1 }
 0x2aa   : > { %1446 = vst [vmem:[%s2642_s28 + $0x4a0] sm:$0xff] %v867_v10  ;;  %1448 = vst [vmem:[%s2642_s28 + $0x4b0] sm:$0xff] %v1226_v11  ;;  %v869_v12 = vpop.f32.mrb[75].mxu0  ;;  %v1228_v13 = vpop.f32.mrb[75].mxu1 }
 0x2ab   : > { %1447 = vst [vmem:[%s2642_s28 + $0x4a8] sm:$0xff] %v869_v12  ;;  %1449 = vst.msk [vmem:[%s2642_s28 + $0x4b8] sm:$0xff] %vm1300_vm1, %v1228_v13 }
 0x2ad   : > { %v873_v14 = vpop.f32.mrb[76].mxu0  ;;  %v1232_v15 = vpop.f32.mrb[76].mxu1 }
 0x2ae   : > { %1450 = vst [vmem:[%s2642_s28 + $0x4c0] sm:$0xff] %v873_v14  ;;  %1452 = vst [vmem:[%s2642_s28 + $0x4d0] sm:$0xff] %v1232_v15  ;;  %v875_v16 = vpop.f32.mrb[77].mxu0  ;;  %v1234_v17 = vpop.f32.mrb[77].mxu1 }
 0x2af   : > { %1451 = vst [vmem:[%s2642_s28 + $0x4c8] sm:$0xff] %v875_v16  ;;  %1453 = vst.msk [vmem:[%s2642_s28 + $0x4d8] sm:$0xff] %vm1300_vm1, %v1234_v17 }
 0x2b1   : > { %v879_v18 = vpop.f32.mrb[78].mxu0  ;;  %v1238_v19 = vpop.f32.mrb[78].mxu1 }
 0x2b2   : > { %1454 = vst [vmem:[%s2642_s28 + $0x4e0] sm:$0xff] %v879_v18  ;;  %1456 = vst [vmem:[%s2642_s28 + $0x4f0] sm:$0xff] %v1238_v19  ;;  %v881_v20 = vpop.f32.mrb[79].mxu0  ;;  %v1240_v21 = vpop.f32.mrb[79].mxu1 }
 0x2b3   : > { %1455 = vst [vmem:[%s2642_s28 + $0x4e8] sm:$0xff] %v881_v20  ;;  %1457 = vst.msk [vmem:[%s2642_s28 + $0x4f8] sm:$0xff] %vm1300_vm1, %v1240_v21 }
 0x2b5   : > { %v885_v22 = vpop.f32.mrb[80].mxu0  ;;  %v1244_v23 = vpop.f32.mrb[80].mxu1 }
 0x2b6   : > { %1458 = vst [vmem:[%s2642_s28 + $0x500] sm:$0xff] %v885_v22  ;;  %1460 = vst [vmem:[%s2642_s28 + $0x510] sm:$0xff] %v1244_v23  ;;  %v887_v24 = vpop.f32.mrb[81].mxu0  ;;  %v1246_v25 = vpop.f32.mrb[81].mxu1 }
 0x2b7   : > { %1459 = vst [vmem:[%s2642_s28 + $0x508] sm:$0xff] %v887_v24  ;;  %1461 = vst.msk [vmem:[%s2642_s28 + $0x518] sm:$0xff] %vm1300_vm1, %v1246_v25 }
 0x2b9   : > { %v891_v26 = vpop.f32.mrb[82].mxu0  ;;  %v1250_v27 = vpop.f32.mrb[82].mxu1 }
 0x2ba   : > { %1462 = vst [vmem:[%s2642_s28 + $0x520] sm:$0xff] %v891_v26  ;;  %1464 = vst [vmem:[%s2642_s28 + $0x530] sm:$0xff] %v1250_v27  ;;  %v893_v28 = vpop.f32.mrb[83].mxu0  ;;  %v1252_v29 = vpop.f32.mrb[83].mxu1 }
 0x2bb   : > { %1463 = vst [vmem:[%s2642_s28 + $0x528] sm:$0xff] %v893_v28  ;;  %1465 = vst.msk [vmem:[%s2642_s28 + $0x538] sm:$0xff] %vm1300_vm1, %v1252_v29 }
 0x2bd   : > { %v897_v30 = vpop.f32.mrb[84].mxu0  ;;  %v1256_v31 = vpop.f32.mrb[84].mxu1 }
 0x2be   : > { %1466 = vst [vmem:[%s2642_s28 + $0x540] sm:$0xff] %v897_v30  ;;  %1468 = vst [vmem:[%s2642_s28 + $0x550] sm:$0xff] %v1256_v31  ;;  %v899_v32 = vpop.f32.mrb[85].mxu0  ;;  %v1258_v34 = vpop.f32.mrb[85].mxu1 }
 0x2bf   : > { %1467 = vst [vmem:[%s2642_s28 + $0x548] sm:$0xff] %v899_v32  ;;  %1469 = vst.msk [vmem:[%s2642_s28 + $0x558] sm:$0xff] %vm1300_vm1, %v1258_v34 }
 0x2c1   : > { %v903_v35 = vpop.f32.mrb[86].mxu0  ;;  %v1262_v36 = vpop.f32.mrb[86].mxu1 }
 0x2c2   : > { %1470 = vst [vmem:[%s2642_s28 + $0x560] sm:$0xff] %v903_v35  ;;  %1472 = vst [vmem:[%s2642_s28 + $0x570] sm:$0xff] %v1262_v36  ;;  %v905_v37 = vpop.f32.mrb[87].mxu0  ;;  %v1264_v38 = vpop.f32.mrb[87].mxu1 }
 0x2c3   : > { %1471 = vst [vmem:[%s2642_s28 + $0x568] sm:$0xff] %v905_v37  ;;  %1473 = vst.msk [vmem:[%s2642_s28 + $0x578] sm:$0xff] %vm1300_vm1, %v1264_v38 }
 0x2c5   : > { %v909_v39 = vpop.f32.mrb[88].mxu0  ;;  %v1268_v40 = vpop.f32.mrb[88].mxu1 }
 0x2c6   : > { %1474 = vst [vmem:[%s2642_s28 + $0x580] sm:$0xff] %v909_v39  ;;  %1476 = vst [vmem:[%s2642_s28 + $0x590] sm:$0xff] %v1268_v40  ;;  %v911_v41 = vpop.f32.mrb[89].mxu0  ;;  %v1270_v42 = vpop.f32.mrb[89].mxu1 }
 0x2c7   : > { %1475 = vst [vmem:[%s2642_s28 + $0x588] sm:$0xff] %v911_v41  ;;  %1477 = vst.msk [vmem:[%s2642_s28 + $0x598] sm:$0xff] %vm1300_vm1, %v1270_v42 }
 0x2c9   : > { %v915_v43 = vpop.f32.mrb[90].mxu0  ;;  %v1274_v44 = vpop.f32.mrb[90].mxu1 }
 0x2ca   : > { %1478 = vst [vmem:[%s2642_s28 + $0x5a0] sm:$0xff] %v915_v43  ;;  %1480 = vst [vmem:[%s2642_s28 + $0x5b0] sm:$0xff] %v1274_v44  ;;  %v917_v45 = vpop.f32.mrb[91].mxu0  ;;  %v1276_v46 = vpop.f32.mrb[91].mxu1 }
 0x2cb   : > { %1479 = vst [vmem:[%s2642_s28 + $0x5a8] sm:$0xff] %v917_v45  ;;  %1481 = vst.msk [vmem:[%s2642_s28 + $0x5b8] sm:$0xff] %vm1300_vm1, %v1276_v46 }
 0x2cd   : > { %v921_v47 = vpop.f32.mrb[92].mxu0  ;;  %v1280_v48 = vpop.f32.mrb[92].mxu1 }
 0x2ce   : > { %1482 = vst [vmem:[%s2642_s28 + $0x5c0] sm:$0xff] %v921_v47  ;;  %1484 = vst [vmem:[%s2642_s28 + $0x5d0] sm:$0xff] %v1280_v48  ;;  %v923_v49 = vpop.f32.mrb[93].mxu0  ;;  %v1282_v50 = vpop.f32.mrb[93].mxu1 }
 0x2cf   : > { %1483 = vst [vmem:[%s2642_s28 + $0x5c8] sm:$0xff] %v923_v49  ;;  %1485 = vst.msk [vmem:[%s2642_s28 + $0x5d8] sm:$0xff] %vm1300_vm1, %v1282_v50 }
 0x2d1   : > { %v927_v51 = vpop.f32.mrb[94].mxu0  ;;  %v1286_v52 = vpop.f32.mrb[94].mxu1 }
 0x2d2   : > { %1486 = vst [vmem:[%s2642_s28 + $0x5e0] sm:$0xff] %v927_v51  ;;  %1488 = vst [vmem:[%s2642_s28 + $0x5f0] sm:$0xff] %v1286_v52  ;;  %v929_v53 = vpop.f32.mrb[95].mxu0  ;;  %v1288_v54 = vpop.f32.mrb[95].mxu1 }
 0x2d3   : > { %1487 = vst [vmem:[%s2642_s28 + $0x5e8] sm:$0xff] %v929_v53  ;;  %1489 = vst.msk [vmem:[%s2642_s28 + $0x5f8] sm:$0xff] %vm1300_vm1, %v1288_v54 }
 0x2d5   : > { %v933_v55 = vpop.f32.mrb[96].mxu0  ;;  %v1292_v56 = vpop.f32.mrb[96].mxu1 }
 0x2d6   : > { %1490 = vst [vmem:[%s2642_s28 + $0x600] sm:$0xff] %v933_v55  ;;  %1492 = vst [vmem:[%s2642_s28 + $0x610] sm:$0xff] %v1292_v56  ;;  %v935_v33 = vpop.f32.mrb[97].mxu0  ;;  %v1294_v57 = vpop.f32.mrb[97].mxu1 }
 0x2d7   : > { %1491 = vst [vmem:[%s2642_s28 + $0x608] sm:$0xff] %v935_v33  ;;  %1493 = vst.msk [vmem:[%s2642_s28 + $0x618] sm:$0xff] %vm1300_vm1, %v1294_v57 }
 0x2d8   : > { %1970 = shalt.err (!%p1967_p1)
}
 0x2d9   : > { %s1971_s15 = scalar_lea.hbm %s2889_s7, 25088  ;;  %s1975_s26 = scalar_lea.hbm %s2950_s5, 50176 }
 0x2da   : > { %p1972_p12 = scmp.ne.s32.totalorder %s2889_s7, %s1971_s15  ;;  %p1976_p5 = scmp.lt.u32.totalorder %s2889_s7, %s2950_s5 }
 0x2db   : > { %p1977_p7 = scmp.lt.u32.totalorder %s1975_s26, %s1971_s15  ;;  %p1979_p2 = scmp.lt.u32.totalorder %s1971_s15, %s2889_s7 }
 0x2dc   : > { %p1973_p10 = pnand %p1972_p12, %p2221_p3 }
 0x2dd   : > { %p1978_p11 = por %p1977_p7, %p1976_p5 }
 0x2de   : > { %p1974_p0 = pneg %p1973_p10 }
 0x2df   : > { %p1980_p4 = por %p1979_p2, %p1978_p11 }
 0x2e1   : > { %p1981_p8 = pnand %p1980_p4, %p1974_p0 }
 0x2e3   : > { %1984 = shalt.err (!%p1981_p8)
}
 0x2e4   : > { %s2061_s14 = smov 512   ;;  %s2062_s30 = smov 32  }
 0x2e5   : > { %1770 = dma.vmem_to_hbm [thread:$0]  (%p2221_p3), %s2891_s8, 25088, %s2889_s7, %s1495_s21, %s2061_s14, %s2061_s14, %s2062_s30  }
 0x2e6 PF: > { %s1525_s10 = sand.u32 1, %s2031_s18   ;;  %p2970_p13 = scmp.ne.s32.totalorder %s2955_s27, 0 }
 0x2e7   : > { %p2971_p9 = scmp.ge.s32.totalorder %s2051_s23, 2  ;;  %s1526_s11 = scalar_lea.sflag [#allocation4], %s1525_s10 }
 0x2e9   : > { %p1787_p6 = pnand %p2971_p9, %p2970_p13 }
 0x2eb   : > { %2026 = dma.done.wait (!%p1787_p6), %s1526_s11, 25088  }
 0x2ec   : > { %2028 = vsyncadd (!%p1787_p6), %s1526_s11, 4294942208  ;;  %s23_s23 = sadd.s32 1, %s2051_s23   ;;  %s2972_s18 = smov %s2035_s19 }
 0x2ed   : > { %p20_p1 = scmp.ge.s32.totalorder %s23_s23, 4   ;;  %s2973_s19 = smov %s2039_s20 }
 0x2ee   : > { %s2974_s20 = smov %s2234_s13  ;;  %s2975_s21 = smov %s2047_s22 }
 0x2ef   : > { %s2976_s22 = smov %s2978_s29  ;;  %22 = sbr.rel (!%p20_p1) target bundleno = 8 (0x8), region = 100 }
 0x2f6   :  { %1531 = vsyncpa [#allocation3], 1 }
 0x2f7   :  { %1533 = vsyncpa [#allocation3 + $0x1], 1 }
 0x2f8   :  { %1534 = vsyncpa [#allocation7], 1 }
 0x2f9   :  { %1536 = vsyncpa [#allocation7 + $0x1], 1 }
 0x2fa   :  { %1537 = vsyncpa [#allocation4], 1 }
 0x2fb   :  { %1539 = vsyncpa [#allocation4 + $0x1], 1 }
 0x2fc   :  { %1540 = vsyncpa [#allocation5], 1 }
 0x2fd   :  { %1542 = vsyncpa [#allocation5 + $0x1], 1 }

</bundles_post_ra>
